<compile_context>
chip_gen: v7x
topology: tpu7x:2x2x1
jax: 0.10.0
libtpu: 0.0.40
codegen_flags: <defaults>
</compile_context>

<pallas_src>
import functools
import math

import jax
import jax.numpy as jnp
from jax.experimental import pallas as pl
from jax.experimental.pallas import tpu as pltpu


_LN_EPS = 1e-5
_DEF_BLOCK_ROWS = 2048       # row tile for projection kernels
_DEF_BLOCK_ROWS_FFN = 1024   # FFN row tile (bm x dim_feedforward f32 intermediate)
_DEF_BLOCK_Q = 1024          # query tile for flash attention
_DEF_BLOCK_K = 1024          # kv tile for flash attention
_VMEM_LIMIT = 48 * 1024 * 1024   # safe on v7x (64 MiB phys) and v5e/v6e (128 MiB)


def _round_up(x, m):
    return ((x + m - 1) // m) * m


def _pick_block_rows(rows, want):
    if rows <= want:
        return rows
    # keep >= 4 grid steps on large inputs (v7x has 2 TensorCores + double buffering)
    return min(want, max(256, _round_up(pl.cdiv(rows, 4), 8)))


# ----------------------------- Pallas kernels -----------------------------

def _q_proj_kernel(*refs, has_pos):
    # q <- (x [+ query_pos]) @ W_q + b_q   (scale pre-folded into W_q / b_q)
    if has_pos:
        x_ref, pos_ref, w_ref, b_ref, o_ref = refs
        x = x_ref[...].astype(jnp.float32) + pos_ref[...].astype(jnp.float32)
    else:
        x_ref, w_ref, b_ref, o_ref = refs
        x = x_ref[...].astype(jnp.float32)
    y = jnp.dot(x.astype(w_ref.dtype), w_ref[...],
                preferred_element_type=jnp.float32) + b_ref[...]
    o_ref[...] = y.astype(o_ref.dtype)


def _flash_fused_kernel(*refs, num_heads, head_dim, kv_len, block_k, has_pos, eps):
    # One (batch, q-tile) per (b, qi) grid point; KV axis is the "arbitrary"
    # grid axis.  Per KV tile: project K from (src [+ pos]) and V from src with
    # the (d,d) weights resident in VMEM, run online softmax for every head via
    # static lane slices, and in the last KV step apply the output projection,
    # residual add and LayerNorm, storing the result with one lane-dense store.
    if has_pos:
        (q_ref, kvsrc_ref, kvpos_ref, res_ref,
         wk_ref, bk_ref, wv_ref, bv_ref, wo_ref, bo_ref, g_ref, beta_ref,
         o_ref, m_sc, l_sc, acc_sc) = refs
    else:
        (q_ref, kvsrc_ref, res_ref,
         wk_ref, bk_ref, wv_ref, bv_ref, wo_ref, bo_ref, g_ref, beta_ref,
         o_ref, m_sc, l_sc, acc_sc) = refs
        kvpos_ref = None

    ki = pl.program_id(2)
    n_kv = pl.num_programs(2)

    @pl.when(ki == 0)
    def _():
        m_sc[...] = jnp.full_like(m_sc, -jnp.inf)
        l_sc[...] = jnp.zeros_like(l_sc)
        acc_sc[...] = jnp.zeros_like(acc_sc)

    q = q_ref[0]                                    # (bq, D) bf16, pre-scaled
    src = kvsrc_ref[0].astype(jnp.float32)          # (bk, D)
    bk_sz = src.shape[0]
    if has_pos:
        k_in = src + kvpos_ref[0].astype(jnp.float32)
    else:
        k_in = src

    needs_mask = (kv_len % block_k) != 0
    bias = None
    if needs_mask:
        # zero the padded rows of the KV source so projected K/V stay finite,
        # and build a (1, bk) additive bias once per tile (not per head)
        row = jax.lax.broadcasted_iota(jnp.int32, (bk_sz, 1), 0)
        valid_row = (ki * block_k + row) < kv_len
        src = jnp.where(valid_row, src, 0.0)
        k_in = src if not has_pos else jnp.where(valid_row, k_in, 0.0)
        col = jax.lax.broadcasted_iota(jnp.int32, (1, bk_sz), 1)
        bias = jnp.where((ki * block_k + col) < kv_len, 0.0, -jnp.inf)

    # in-kernel K / V projection for this KV tile (bf16 MXU, f32 accumulation)
    k = (jnp.dot(k_in.astype(wk_ref.dtype), wk_ref[...],
                 preferred_element_type=jnp.float32)
         + bk_ref[...]).astype(jnp.bfloat16)
    v = (jnp.dot(src.astype(wv_ref.dtype), wv_ref[...],
                 preferred_element_type=jnp.float32)
         + bv_ref[...]).astype(jnp.bfloat16)

    for h in range(num_heads):
        sl = slice(h * head_dim, (h + 1) * head_dim)
        s = jax.lax.dot_general(q[:, sl], k[:, sl],
                                (((1,), (1,)), ((), ())),
                                preferred_element_type=jnp.float32)   # (bq, bk)
        if needs_mask:
            s = s + bias
        m_prev = m_sc[h]                              # (bq, 1)
        m_new = jnp.maximum(m_prev, jnp.max(s, axis=-1, keepdims=True))
        alpha = jnp.exp(m_prev - m_new)
        p = jnp.exp(s - m_new)
        l_sc[h] = alpha * l_sc[h] + jnp.sum(p, axis=-1, keepdims=True)
        pv = jax.lax.dot_general(p.astype(v.dtype), v[:, sl],
                                 (((1,), (0,)), ((), ())),
                                 preferred_element_type=jnp.float32)  # (bq, hd)
        acc_sc[:, sl] = alpha * acc_sc[:, sl] + pv
        m_sc[h] = m_new

    @pl.when(ki == n_kv - 1)
    def _():
        bq_sz = acc_sc.shape[0]
        if num_heads == 1:
            inv = pl.reciprocal(l_sc[0], approx=True)             # (bq, 1)
        else:
            inv = jnp.concatenate(
                [jnp.broadcast_to(pl.reciprocal(l_sc[h], approx=True),
                                  (bq_sz, head_dim))
                 for h in range(num_heads)], axis=-1)             # (bq, D)
        attn = acc_sc[...] * inv
        # fused output projection + residual + LayerNorm
        y = jnp.dot(attn.astype(wo_ref.dtype), wo_ref[...],
                    preferred_element_type=jnp.float32) + bo_ref[...]
        x = res_ref[0].astype(jnp.float32) + y
        mean = jnp.mean(x, axis=-1, keepdims=True)
        xc = x - mean
        var = jnp.mean(xc * xc, axis=-1, keepdims=True)
        o_ref[0] = (xc * jax.lax.rsqrt(var + eps) * g_ref[...]
                    + beta_ref[...]).astype(o_ref.dtype)          # lane-dense store


def _ln_ffn_res_kernel(x_ref, g_ref, b_ref, w1_ref, b1_ref, w2_ref, b2_ref,
                       o_ref, *, eps):
    # x + linear2(relu(linear1(LayerNorm(x))))
    x = x_ref[...].astype(jnp.float32)
    mean = jnp.mean(x, axis=-1, keepdims=True)
    xc = x - mean
    var = jnp.mean(xc * xc, axis=-1, keepdims=True)
    t = xc * jax.lax.rsqrt(var + eps) * g_ref[...] + b_ref[...]
    h = jnp.dot(t.astype(w1_ref.dtype), w1_ref[...],
                preferred_element_type=jnp.float32) + b1_ref[...]
    h = jnp.maximum(h, 0.0)                                   # activation = relu
    y = jnp.dot(h.astype(w2_ref.dtype), w2_ref[...],
                preferred_element_type=jnp.float32) + b2_ref[...]
    o_ref[...] = (x + y).astype(o_ref.dtype)


# ----------------------------- kernel wrappers -----------------------------

def _rows_call(kernel, rows, out_dims, out_dtypes, tiled_args, full_args,
               block_rows):
    """Row-tiled pallas_call: `tiled_args` share the row axis; `full_args`
    (weights / biases / LN params, all 2-D) are passed whole."""
    bm = _pick_block_rows(rows, block_rows)
    grid = (pl.cdiv(rows, bm),)
    in_specs = ([pl.BlockSpec((bm, a.shape[1]), lambda i: (i, 0))
                 for a in tiled_args]
                + [pl.BlockSpec(a.shape, lambda i: (0, 0)) for a in full_args])
    out_specs = tuple(pl.BlockSpec((bm, d), lambda i: (i, 0)) for d in out_dims)
    out_shape = tuple(jax.ShapeDtypeStruct((rows, d), dt)
                      for d, dt in zip(out_dims, out_dtypes))
    single = len(out_dims) == 1
    return pl.pallas_call(
        kernel,
        grid=grid,
        in_specs=in_specs,
        out_specs=out_specs[0] if single else out_specs,
        out_shape=out_shape[0] if single else out_shape,
        compiler_params=pltpu.CompilerParams(
            dimension_semantics=("parallel",),
            vmem_limit_bytes=_VMEM_LIMIT),
    )(*tiled_args, *full_args)


def q_proj(x2d, pos2d, w, b, scale, block_rows=_DEF_BLOCK_ROWS):
    rows = x2d.shape[0]
    # fold 1/sqrt(head_dim) into the (d,d)/(1,d) weight once (outside the kernel)
    w_s = (w.astype(jnp.float32) * scale).astype(w.dtype)
    b_s = (b * scale).astype(b.dtype)
    has_pos = pos2d is not None
    kern = functools.partial(_q_proj_kernel, has_pos=has_pos)
    tiled = [x2d, pos2d] if has_pos else [x2d]
    return _rows_call(kern, rows, (w.shape[1],), (jnp.bfloat16,),
                      tiled, [w_s, b_s], block_rows)


def flash_fused_attention(q, kvsrc, kvpos, res, wk, bk, wv, bv, wo, bo,
                          gamma, beta, num_heads, out_dtype=jnp.bfloat16,
                          block_q=_DEF_BLOCK_Q, block_k=_DEF_BLOCK_K):
    B, nq, d = q.shape
    nk = kvsrc.shape[1]
    hd = d // num_heads
    bq = min(block_q, nq)
    bkv = min(block_k, nk)
    grid = (B, pl.cdiv(nq, bq), pl.cdiv(nk, bkv))
    has_pos = kvpos is not None

    kern = functools.partial(_flash_fused_kernel, num_heads=num_heads,
                             head_dim=hd, kv_len=nk, block_k=bkv,
                             has_pos=has_pos, eps=_LN_EPS)

    q_spec = pl.BlockSpec((1, bq, d), lambda b, qi, ki: (b, qi, 0))
    kv_spec = pl.BlockSpec((1, bkv, d), lambda b, qi, ki: (b, ki, 0))

    def full_spec(a):
        return pl.BlockSpec(a.shape, lambda b, qi, ki: (0, 0))

    tiled = [q, kvsrc] + ([kvpos] if has_pos else []) + [res]
    tiled_specs = [q_spec, kv_spec] + ([kv_spec] if has_pos else []) + [q_spec]
    full = [wk, bk, wv, bv, wo, bo, gamma, beta]

    return pl.pallas_call(
        kern,
        out_shape=jax.ShapeDtypeStruct((B, nq, d), out_dtype),
        grid=grid,
        in_specs=tiled_specs + [full_spec(a) for a in full],
        out_specs=pl.BlockSpec((1, bq, d), lambda b, qi, ki: (b, qi, 0)),
        scratch_shapes=[
            pltpu.VMEM((num_heads, bq, 1), jnp.float32),   # running max / head
            pltpu.VMEM((num_heads, bq, 1), jnp.float32),   # running denom / head
            pltpu.VMEM((bq, d), jnp.float32),              # output accumulator
        ],
        compiler_params=pltpu.CompilerParams(
            dimension_semantics=("parallel", "parallel", "arbitrary"),
            vmem_limit_bytes=_VMEM_LIMIT),
    )(*tiled, *full)


def ln_ffn_res(x2d, gamma, beta, w1, b1, w2, b2,
               block_rows=_DEF_BLOCK_ROWS_FFN):
    rows, d = x2d.shape
    kern = functools.partial(_ln_ffn_res_kernel, eps=_LN_EPS)
    return _rows_call(kern, rows, (d,), (jnp.float32,),
                      [x2d], [gamma, beta, w1, b1, w2, b2], block_rows)


# ----------------------------- module -----------------------------

class MemoryAttentionLayerPallas:
    def __init__(self, *, d_model, dim_feedforward, num_heads, activation,
                 dropout, pos_enc_at_attn, pos_enc_at_cross_attn_keys,
                 pos_enc_at_cross_attn_queries, skip_first_layer_pe=False,
                 weight_dtype=jnp.bfloat16, seed=42):
        assert activation == "relu", "only relu implemented"
        assert d_model % num_heads == 0
        self.d_model = d_model
        self.dim_feedforward = dim_feedforward
        self.num_heads = num_heads
        self.head_dim = d_model // num_heads
        self.scale = 1.0 / math.sqrt(self.head_dim)
        self.dropout_value = dropout                  # identity at inference
        self.pos_enc_at_attn = pos_enc_at_attn        # unused by reference _forward_sa
        self.pos_enc_at_cross_attn_keys = pos_enc_at_cross_attn_keys
        self.pos_enc_at_cross_attn_queries = pos_enc_at_cross_attn_queries
        self.skip_first_layer_pe = skip_first_layer_pe
        self.weight_dtype = weight_dtype
        self.params = self._init_params(jax.random.PRNGKey(seed))

    # deterministic synthetic parameter init (no checkpoint load)
    def _init_params(self, key):
        d, f = self.d_model, self.dim_feedforward
        wdt = self.weight_dtype

        def lin(k, din, dout, scale=0.05):
            kw, kb = jax.random.split(k)
            w = (jax.random.normal(kw, (din, dout), jnp.float32) * scale).astype(wdt)
            b = jax.random.normal(kb, (1, dout), jnp.float32) * scale
            return w, b

        def ln(dd):
            return {"g": jnp.ones((1, dd), jnp.float32),
                    "b": jnp.zeros((1, dd), jnp.float32)}

        ks = jax.random.split(key, 10)

        def attn_params(k4):
            kq, kk, kv, ko = k4
            wq, bq = lin(kq, d, d)
            wk, bk = lin(kk, d, d)
            wv, bv = lin(kv, d, d)
            wo, bo = lin(ko, d, d)
            return {"wq": wq, "bq": bq, "wk": wk, "bk": bk,
                    "wv": wv, "bv": bv, "wo": wo, "bo": bo}

        w1, b1 = lin(ks[8], d, f)
        w2, b2 = lin(ks[9], f, d)
        return {
            "self_attn": attn_params(ks[0:4]),
            "cross_attn": attn_params(ks[4:8]),
            "linear1": {"w": w1, "b": b1}, "linear2": {"w": w2, "b": b2},
            "norm1": ln(d), "norm2": ln(d), "norm3": ln(d), "norm4": ln(d),
        }

    def __call__(self, tgt, memory, pos=None, query_pos=None):
        # TODO(synk): skip_first_layer_pe=True branch (q=k=v=tgt, no residual on
        #             the self-attn output) is not wired; default False path only.
        p = self.params
        B, nq, d = tgt.shape
        h = self.num_heads

        tgt2d = tgt.reshape(B * nq, d)
        qpos2d = query_pos.reshape(B * nq, d)

        # ---- self-attention: tgt = norm1(tgt + SelfAttn(tgt+qp, tgt+qp, tgt))
        sa = p["self_attn"]
        q2d = q_proj(tgt2d, qpos2d, sa["wq"], sa["bq"], self.scale)
        tgt_sa = flash_fused_attention(
            q2d.reshape(B, nq, d), tgt, query_pos, tgt,
            sa["wk"], sa["bk"], sa["wv"], sa["bv"], sa["wo"], sa["bo"],
            p["norm1"]["g"], p["norm1"]["b"], h)                     # bf16

        # ---- cross-attention: tgt = norm2(tgt + CrossAttn(q, k, memory))
        ca = p["cross_attn"]
        q2d = q_proj(tgt_sa.reshape(B * nq, d),
                     qpos2d if self.pos_enc_at_cross_attn_queries else None,
                     ca["wq"], ca["bq"], self.scale)
        kvpos = pos if self.pos_enc_at_cross_attn_keys else None
        tgt_ca = flash_fused_attention(
            q2d.reshape(B, nq, d), memory, kvpos, tgt_sa,
            ca["wk"], ca["bk"], ca["wv"], ca["bv"], ca["wo"], ca["bo"],
            p["norm2"]["g"], p["norm2"]["b"], h)                     # bf16

        # ---- FFN: tgt = tgt + linear2(relu(linear1(norm3(tgt))))
        out2d = ln_ffn_res(tgt_ca.reshape(B * nq, d),
                           p["norm3"]["g"], p["norm3"]["b"],
                           p["linear1"]["w"], p["linear1"]["b"],
                           p["linear2"]["w"], p["linear2"]["b"])
        return out2d.reshape(B, nq, d)


# ----------------------------- pure-JAX reference -----------------------------

def _layer_norm_ref(x, g, b, eps=_LN_EPS):
    m = jnp.mean(x, axis=-1, keepdims=True)
    v = jnp.mean((x - m) ** 2, axis=-1, keepdims=True)
    return (x - m) * jax.lax.rsqrt(v + eps) * g + b


def _mha_ref(q_in, k_in, v_in, wq, bq, wk, bk, wv, bv, wo, bo, num_heads):
    b, nq, d = q_in.shape
    nk = k_in.shape[1]
    hd = d // num_heads
    scale = 1.0 / math.sqrt(hd)
    q = (q_in @ wq + bq).reshape(b, nq, num_heads, hd).transpose(0, 2, 1, 3)
    k = (k_in @ wk + bk).reshape(b, nk, num_heads, hd).transpose(0, 2, 1, 3)
    v = (v_in @ wv + bv).reshape(b, nk, num_heads, hd).transpose(0, 2, 1, 3)
    s = jnp.einsum("bhqd,bhkd->bhqk", q, k) * scale
    a = jax.nn.softmax(s, axis=-1)
    o = jnp.einsum("bhqk,bhkd->bhqd", a, v)
    o = o.transpose(0, 2, 1, 3).reshape(b, nq, d)
    return o @ wo + bo


def _reference_forward(layer, tgt, memory, pos, query_pos):
    p = layer.params
    H = layer.num_heads
    f32 = jnp.float32
    sa, ca = p["self_attn"], p["cross_attn"]

    # self-attention block
    q = tgt + query_pos
    attn = _mha_ref(q, q, tgt,
                    sa["wq"].astype(f32), sa["bq"], sa["wk"].astype(f32), sa["bk"],
                    sa["wv"].astype(f32), sa["bv"], sa["wo"].astype(f32), sa["bo"], H)
    t = _layer_norm_ref(tgt + attn, p["norm1"]["g"], p["norm1"]["b"])

    # cross-attention block
    qc = t + query_pos if layer.pos_enc_at_cross_attn_queries else t
    kc = memory + pos if layer.pos_enc_at_cross_attn_keys else memory
    attn = _mha_ref(qc, kc, memory,
                    ca["wq"].astype(f32), ca["bq"], ca["wk"].astype(f32), ca["bk"],
                    ca["wv"].astype(f32), ca["bv"], ca["wo"].astype(f32), ca["bo"], H)
    t = _layer_norm_ref(t + attn, p["norm2"]["g"], p["norm2"]["b"])

    # FFN block
    t2 = _layer_norm_ref(t, p["norm3"]["g"], p["norm3"]["b"])
    hdn = jnp.maximum(t2 @ p["linear1"]["w"].astype(f32) + p["linear1"]["b"], 0.0)
    y = hdn @ p["linear2"]["w"].astype(f32) + p["linear2"]["b"]
    return t + y


# ----------------------------- demo -----------------------------

if __name__ == "__main__":
    B, Nq, Nk, D, F, H = 2, 8, 16, 32, 64, 2

    key = jax.random.PRNGKey(0)
    k1, k2, k3, k4 = jax.random.split(key, 4)
    tgt = jax.random.normal(k1, (B, Nq, D), jnp.float32)        # target tokens
    memory = jax.random.normal(k2, (B, Nk, D), jnp.float32)     # memory tokens
    query_pos = jax.random.normal(k3, (B, Nq, D), jnp.float32)  # pos enc for tgt
    pos = jax.random.normal(k4, (B, Nk, D), jnp.float32)        # pos enc for memory

    layer = MemoryAttentionLayerPallas(
        d_model=D,
        dim_feedforward=F,
        num_heads=H,
        activation="relu",
        dropout=0.1,
        pos_enc_at_attn=False,
        pos_enc_at_cross_attn_keys=True,
        pos_enc_at_cross_attn_queries=False,
    )

    fwd = jax.jit(lambda t, m, p_, qp: layer(t, m, pos=p_, query_pos=qp))
    out = fwd(tgt, memory, pos, query_pos)
    jax.block_until_ready(out)

    assert out.shape == (B, Nq, D), out.shape
    assert bool(jnp.all(jnp.isfinite(out)))

    # loose sanity check vs a pure-JAX f32 reference (kernels use bf16 MXU operands
    # and bf16 residual-stream intermediates)
    ref = _reference_forward(layer, tgt, memory, pos, query_pos)
    max_err = float(jnp.max(jnp.abs(out - ref)))
    assert max_err < 2e-1, max_err

    print("KERNEL_OK")
</pallas_src>

<mosaic_0001>
module attributes {stable_mosaic.version = 11 : i64} {
  func.func @_q_proj_kernel(%arg0: i32, %arg1: memref<16x32xbf16, #tpu.memory_space<vmem>>, %arg2: memref<32x32xbf16, #tpu.memory_space<vmem>>, %arg3: memref<1x32xf32, #tpu.memory_space<vmem>>, %arg4: memref<16x32xbf16, #tpu.memory_space<vmem>>) attributes {dimension_semantics = [#tpu.dimension_semantics<parallel>], iteration_bounds = array<i64: 1>, scalar_prefetch = 0 : i64, scratch_operands = 0 : i64, tpu.core_type = #tpu.core_type<tc>, window_params = [{transform_indices = @transform_0, window_bounds = array<i64: 16, 32>}, {pipeline_mode = #tpu.pipeline_mode<synchronous>, transform_indices = @transform_1, window_bounds = array<i64: 32, 32>}, {pipeline_mode = #tpu.pipeline_mode<synchronous>, transform_indices = @transform_2, window_bounds = array<i64: 1, 32>}, {transform_indices = @transform_3, window_bounds = array<i64: 16, 32>}]} {
    %c0 = arith.constant 0 : index
    %c0_0 = arith.constant 0 : index
    %0 = vector.load %arg1[%c0, %c0_0] : memref<16x32xbf16, #tpu.memory_space<vmem>>, vector<16x32xbf16>
    %1 = arith.extf %0 : vector<16x32xbf16> to vector<16x32xf32>
    %2 = arith.truncf %1 : vector<16x32xf32> to vector<16x32xbf16>
    %c0_1 = arith.constant 0 : index
    %c0_2 = arith.constant 0 : index
    %3 = vector.load %arg2[%c0_1, %c0_2] : memref<32x32xbf16, #tpu.memory_space<vmem>>, vector<32x32xbf16>
    %cst = arith.constant dense<0.000000e+00> : vector<16x32xf32>
    %4 = tpu.matmul %2, %3, %cst {dimension_numbers = #tpu.dot_dimension_numbers<[1], [0], [0], [1], [0, 0, 1, 1], [], []>} : vector<16x32xbf16>, vector<32x32xbf16>, vector<16x32xf32> -> vector<16x32xf32>
    %c0_3 = arith.constant 0 : index
    %c0_4 = arith.constant 0 : index
    %5 = vector.load %arg3[%c0_3, %c0_4] : memref<1x32xf32, #tpu.memory_space<vmem>>, vector<1x32xf32>
    %6 = vector.broadcast %5 : vector<1x32xf32> to vector<16x32xf32>
    %7 = arith.addf %4, %6 : vector<16x32xf32>
    %8 = arith.truncf %7 : vector<16x32xf32> to vector<16x32xbf16>
    %c0_5 = arith.constant 0 : index
    %c0_6 = arith.constant 0 : index
    %9 = vector.load %arg4[%c0_5, %c0_6] : memref<16x32xbf16, #tpu.memory_space<vmem>>, vector<16x32xbf16>
    tpu.vector_store %arg4[%c0_5, %c0_6], %8 {strides = array<i32>} : memref<16x32xbf16, #tpu.memory_space<vmem>>, vector<16x32xbf16>,
    return
  }
  func.func @transform_0(%arg0: i32) -> (i32, i32) {
    %c0_i32 = arith.constant 0 : i32
    %c0_i32_0 = arith.constant 0 : i32
    return %arg0, %c0_i32 : i32, i32
  }
  func.func @transform_1(%arg0: i32) -> (i32, i32) {
    %c0_i32 = arith.constant 0 : i32
    %c0_i32_0 = arith.constant 0 : i32
    %c0_i32_1 = arith.constant 0 : i32
    return %c0_i32, %c0_i32_0 : i32, i32
  }
  func.func @transform_2(%arg0: i32) -> (i32, i32) {
    %c0_i32 = arith.constant 0 : i32
    %c0_i32_0 = arith.constant 0 : i32
    %c0_i32_1 = arith.constant 0 : i32
    return %c0_i32, %c0_i32_0 : i32, i32
  }
  func.func @transform_3(%arg0: i32) -> (i32, i32) {
    %c0_i32 = arith.constant 0 : i32
    %c0_i32_0 = arith.constant 0 : i32
    return %arg0, %c0_i32 : i32, i32
  }
}

module attributes {stable_mosaic.version = 11 : i64} {
  func.func @_q_proj_kernel(%arg0: i32, %arg1: memref<16x32xf32, #tpu.memory_space<vmem>>, %arg2: memref<16x32xf32, #tpu.memory_space<vmem>>, %arg3: memref<32x32xbf16, #tpu.memory_space<vmem>>, %arg4: memref<1x32xf32, #tpu.memory_space<vmem>>, %arg5: memref<16x32xbf16, #tpu.memory_space<vmem>>) attributes {dimension_semantics = [#tpu.dimension_semantics<parallel>], iteration_bounds = array<i64: 1>, scalar_prefetch = 0 : i64, scratch_operands = 0 : i64, tpu.core_type = #tpu.core_type<tc>, window_params = [{transform_indices = @transform_0, window_bounds = array<i64: 16, 32>}, {transform_indices = @transform_1, window_bounds = array<i64: 16, 32>}, {pipeline_mode = #tpu.pipeline_mode<synchronous>, transform_indices = @transform_2, window_bounds = array<i64: 32, 32>}, {pipeline_mode = #tpu.pipeline_mode<synchronous>, transform_indices = @transform_3, window_bounds = array<i64: 1, 32>}, {transform_indices = @transform_4, window_bounds = array<i64: 16, 32>}]} {
    %c0 = arith.constant 0 : index
    %c0_0 = arith.constant 0 : index
    %0 = vector.load %arg1[%c0, %c0_0] : memref<16x32xf32, #tpu.memory_space<vmem>>, vector<16x32xf32>
    %c0_1 = arith.constant 0 : index
    %c0_2 = arith.constant 0 : index
    %1 = vector.load %arg2[%c0_1, %c0_2] : memref<16x32xf32, #tpu.memory_space<vmem>>, vector<16x32xf32>
    %2 = arith.addf %0, %1 : vector<16x32xf32>
    %3 = arith.truncf %2 : vector<16x32xf32> to vector<16x32xbf16>
    %c0_3 = arith.constant 0 : index
    %c0_4 = arith.constant 0 : index
    %4 = vector.load %arg3[%c0_3, %c0_4] : memref<32x32xbf16, #tpu.memory_space<vmem>>, vector<32x32xbf16>
    %cst = arith.constant dense<0.000000e+00> : vector<16x32xf32>
    %5 = tpu.matmul %3, %4, %cst {dimension_numbers = #tpu.dot_dimension_numbers<[1], [0], [0], [1], [0, 0, 1, 1], [], []>} : vector<16x32xbf16>, vector<32x32xbf16>, vector<16x32xf32> -> vector<16x32xf32>
    %c0_5 = arith.constant 0 : index
    %c0_6 = arith.constant 0 : index
    %6 = vector.load %arg4[%c0_5, %c0_6] : memref<1x32xf32, #tpu.memory_space<vmem>>, vector<1x32xf32>
    %7 = vector.broadcast %6 : vector<1x32xf32> to vector<16x32xf32>
    %8 = arith.addf %5, %7 : vector<16x32xf32>
    %9 = arith.truncf %8 : vector<16x32xf32> to vector<16x32xbf16>
    %c0_7 = arith.constant 0 : index
    %c0_8 = arith.constant 0 : index
    %10 = vector.load %arg5[%c0_7, %c0_8] : memref<16x32xbf16, #tpu.memory_space<vmem>>, vector<16x32xbf16>
    tpu.vector_store %arg5[%c0_7, %c0_8], %9 {strides = array<i32>} : memref<16x32xbf16, #tpu.memory_space<vmem>>, vector<16x32xbf16>,
    return
  }
  func.func @transform_0(%arg0: i32) -> (i32, i32) {
    %c0_i32 = arith.constant 0 : i32
    %c0_i32_0 = arith.constant 0 : i32
    return %arg0, %c0_i32 : i32, i32
  }
  func.func @transform_1(%arg0: i32) -> (i32, i32) {
    %c0_i32 = arith.constant 0 : i32
    %c0_i32_0 = arith.constant 0 : i32
    return %arg0, %c0_i32 : i32, i32
  }
  func.func @transform_2(%arg0: i32) -> (i32, i32) {
    %c0_i32 = arith.constant 0 : i32
    %c0_i32_0 = arith.constant 0 : i32
    %c0_i32_1 = arith.constant 0 : i32
    return %c0_i32, %c0_i32_0 : i32, i32
  }
  func.func @transform_3(%arg0: i32) -> (i32, i32) {
    %c0_i32 = arith.constant 0 : i32
    %c0_i32_0 = arith.constant 0 : i32
    %c0_i32_1 = arith.constant 0 : i32
    return %c0_i32, %c0_i32_0 : i32, i32
  }
  func.func @transform_4(%arg0: i32) -> (i32, i32) {
    %c0_i32 = arith.constant 0 : i32
    %c0_i32_0 = arith.constant 0 : i32
    return %arg0, %c0_i32 : i32, i32
  }
}

module attributes {stable_mosaic.version = 11 : i64} {
  func.func @_flash_fused_kernel(%arg0: i32, %arg1: i32, %arg2: i32, %arg3: memref<1x8x32xbf16, #tpu.memory_space<vmem>>, %arg4: memref<1x8x32xf32, #tpu.memory_space<vmem>>, %arg5: memref<1x8x32xf32, #tpu.memory_space<vmem>>, %arg6: memref<1x8x32xf32, #tpu.memory_space<vmem>>, %arg7: memref<32x32xbf16, #tpu.memory_space<vmem>>, %arg8: memref<1x32xf32, #tpu.memory_space<vmem>>, %arg9: memref<32x32xbf16, #tpu.memory_space<vmem>>, %arg10: memref<1x32xf32, #tpu.memory_space<vmem>>, %arg11: memref<32x32xbf16, #tpu.memory_space<vmem>>, %arg12: memref<1x32xf32, #tpu.memory_space<vmem>>, %arg13: memref<1x32xf32, #tpu.memory_space<vmem>>, %arg14: memref<1x32xf32, #tpu.memory_space<vmem>>, %arg15: memref<1x8x32xbf16, #tpu.memory_space<vmem>>, %arg16: memref<2x8x1xf32, #tpu.memory_space<vmem>>, %arg17: memref<2x8x1xf32, #tpu.memory_space<vmem>>, %arg18: memref<8x32xf32, #tpu.memory_space<vmem>>) attributes {dimension_semantics = [#tpu.dimension_semantics<parallel>, #tpu.dimension_semantics<parallel>, #tpu.dimension_semantics<arbitrary>], iteration_bounds = array<i64: 2, 1, 1>, scalar_prefetch = 0 : i64, scratch_operands = 3 : i64, tpu.core_type = #tpu.core_type<tc>, window_params = [{transform_indices = @transform_0, window_bounds = array<i64: 1, 8, 32>}, {transform_indices = @transform_1, window_bounds = array<i64: 1, 8, 32>}, {transform_indices = @transform_2, window_bounds = array<i64: 1, 8, 32>}, {transform_indices = @transform_3, window_bounds = array<i64: 1, 8, 32>}, {pipeline_mode = #tpu.pipeline_mode<synchronous>, transform_indices = @transform_4, window_bounds = array<i64: 32, 32>}, {pipeline_mode = #tpu.pipeline_mode<synchronous>, transform_indices = @transform_5, window_bounds = array<i64: 1, 32>}, {pipeline_mode = #tpu.pipeline_mode<synchronous>, transform_indices = @transform_6, window_bounds = array<i64: 32, 32>}, {pipeline_mode = #tpu.pipeline_mode<synchronous>, transform_indices = @transform_7, window_bounds = array<i64: 1, 32>}, {pipeline_mode = #tpu.pipeline_mode<synchronous>, transform_indices = @transform_8, window_bounds = array<i64: 32, 32>}, {pipeline_mode = #tpu.pipeline_mode<synchronous>, transform_indices = @transform_9, window_bounds = array<i64: 1, 32>}, {pipeline_mode = #tpu.pipeline_mode<synchronous>, transform_indices = @transform_10, window_bounds = array<i64: 1, 32>}, {pipeline_mode = #tpu.pipeline_mode<synchronous>, transform_indices = @transform_11, window_bounds = array<i64: 1, 32>}, {transform_indices = @transform_12, window_bounds = array<i64: 1, 8, 32>}]} {
    %c0_i32 = arith.constant 0 : i32
    %0 = arith.cmpi eq, %arg2, %c0_i32 : i32
    %1 = arith.extui %0 : i1 to i32
    %c0_i32_0 = arith.constant 0 : i32
    %2 = arith.cmpi ne, %1, %c0_i32_0 : i32
    scf.if %2 {
      %cst_58 = arith.constant 0xFF800000 : f32
      %93 = vector.broadcast %cst_58 : f32 to vector<2x8x1xf32>
      %c0_59 = arith.constant 0 : index
      %c0_60 = arith.constant 0 : index
      %c0_61 = arith.constant 0 : index
      %94 = vector.load %arg16[%c0_59, %c0_60, %c0_61] : memref<2x8x1xf32, #tpu.memory_space<vmem>>, vector<2x8x1xf32>
      tpu.vector_store %arg16[%c0_59, %c0_60, %c0_61], %93 {strides = array<i32>} : memref<2x8x1xf32, #tpu.memory_space<vmem>>, vector<2x8x1xf32>,
      %cst_62 = arith.constant 0.000000e+00 : f32
      %95 = vector.broadcast %cst_62 : f32 to vector<2x8x1xf32>
      %c0_63 = arith.constant 0 : index
      %c0_64 = arith.constant 0 : index
      %c0_65 = arith.constant 0 : index
      %96 = vector.load %arg17[%c0_63, %c0_64, %c0_65] : memref<2x8x1xf32, #tpu.memory_space<vmem>>, vector<2x8x1xf32>
      tpu.vector_store %arg17[%c0_63, %c0_64, %c0_65], %95 {strides = array<i32>} : memref<2x8x1xf32, #tpu.memory_space<vmem>>, vector<2x8x1xf32>,
      %cst_66 = arith.constant 0.000000e+00 : f32
      %97 = vector.broadcast %cst_66 : f32 to vector<8x32xf32>
      %c0_67 = arith.constant 0 : index
      %c0_68 = arith.constant 0 : index
      %98 = vector.load %arg18[%c0_67, %c0_68] : memref<8x32xf32, #tpu.memory_space<vmem>>, vector<8x32xf32>
      tpu.vector_store %arg18[%c0_67, %c0_68], %97 {strides = array<i32>} : memref<8x32xf32, #tpu.memory_space<vmem>>, vector<8x32xf32>,
    } else {
    }
    %c0 = arith.constant 0 : index
    %c0_1 = arith.constant 0 : index
    %c0_2 = arith.constant 0 : index
    %3 = vector.load %arg3[%c0, %c0_1, %c0_2] : memref<1x8x32xbf16, #tpu.memory_space<vmem>>, vector<1x8x32xbf16>
    %4 = vector.shape_cast %3 : vector<1x8x32xbf16> to vector<8x32xbf16>
    %c0_3 = arith.constant 0 : index
    %c0_4 = arith.constant 0 : index
    %c0_5 = arith.constant 0 : index
    %5 = vector.load %arg4[%c0_3, %c0_4, %c0_5] : memref<1x8x32xf32, #tpu.memory_space<vmem>>, vector<1x8x32xf32>
    %6 = vector.shape_cast %5 : vector<1x8x32xf32> to vector<8x32xf32>
    %c0_6 = arith.constant 0 : index
    %c0_7 = arith.constant 0 : index
    %c0_8 = arith.constant 0 : index
    %7 = vector.load %arg5[%c0_6, %c0_7, %c0_8] : memref<1x8x32xf32, #tpu.memory_space<vmem>>, vector<1x8x32xf32>
    %8 = vector.shape_cast %7 : vector<1x8x32xf32> to vector<8x32xf32>
    %9 = arith.addf %6, %8 : vector<8x32xf32>
    %10 = arith.truncf %9 : vector<8x32xf32> to vector<8x32xbf16>
    %c0_9 = arith.constant 0 : index
    %c0_10 = arith.constant 0 : index
    %11 = vector.load %arg7[%c0_9, %c0_10] : memref<32x32xbf16, #tpu.memory_space<vmem>>, vector<32x32xbf16>
    %cst = arith.constant dense<0.000000e+00> : vector<8x32xf32>
    %12 = tpu.matmul %10, %11, %cst {dimension_numbers = #tpu.dot_dimension_numbers<[1], [0], [0], [1], [0, 0, 1, 1], [], []>} : vector<8x32xbf16>, vector<32x32xbf16>, vector<8x32xf32> -> vector<8x32xf32>
    %c0_11 = arith.constant 0 : index
    %c0_12 = arith.constant 0 : index
    %13 = vector.load %arg8[%c0_11, %c0_12] : memref<1x32xf32, #tpu.memory_space<vmem>>, vector<1x32xf32>
    %14 = vector.broadcast %13 : vector<1x32xf32> to vector<8x32xf32>
    %15 = arith.addf %12, %14 : vector<8x32xf32>
    %16 = arith.truncf %15 : vector<8x32xf32> to vector<8x32xbf16>
    %17 = arith.truncf %6 : vector<8x32xf32> to vector<8x32xbf16>
    %c0_13 = arith.constant 0 : index
    %c0_14 = arith.constant 0 : index
    %18 = vector.load %arg9[%c0_13, %c0_14] : memref<32x32xbf16, #tpu.memory_space<vmem>>, vector<32x32xbf16>
    %cst_15 = arith.constant dense<0.000000e+00> : vector<8x32xf32>
    %19 = tpu.matmul %17, %18, %cst_15 {dimension_numbers = #tpu.dot_dimension_numbers<[1], [0], [0], [1], [0, 0, 1, 1], [], []>} : vector<8x32xbf16>, vector<32x32xbf16>, vector<8x32xf32> -> vector<8x32xf32>
    %c0_16 = arith.constant 0 : index
    %c0_17 = arith.constant 0 : index
    %20 = vector.load %arg10[%c0_16, %c0_17] : memref<1x32xf32, #tpu.memory_space<vmem>>, vector<1x32xf32>
    %21 = vector.broadcast %20 : vector<1x32xf32> to vector<8x32xf32>
    %22 = arith.addf %19, %21 : vector<8x32xf32>
    %23 = arith.truncf %22 : vector<8x32xf32> to vector<8x32xbf16>
    %24 = vector.extract_strided_slice %4 {offsets = [0, 0], sizes = [8, 16], strides = [1, 1]} : vector<8x32xbf16> to vector<8x16xbf16>
    %25 = vector.extract_strided_slice %16 {offsets = [0, 0], sizes = [8, 16], strides = [1, 1]} : vector<8x32xbf16> to vector<8x16xbf16>
    %cst_18 = arith.constant dense<0.000000e+00> : vector<8x8xf32>
    %26 = tpu.matmul %24, %25, %cst_18 {dimension_numbers = #tpu.dot_dimension_numbers<[1], [1], [0], [0], [0, 0, 1, 0], [], []>} : vector<8x16xbf16>, vector<8x16xbf16>, vector<8x8xf32> -> vector<8x8xf32>
    %c0_19 = arith.constant 0 : index
    %c0_20 = arith.constant 0 : index
    %c0_21 = arith.constant 0 : index
    %27 = vector.load %arg16[%c0_19, %c0_20, %c0_21] : memref<2x8x1xf32, #tpu.memory_space<vmem>>, vector<1x8x1xf32>
    %28 = vector.shape_cast %27 : vector<1x8x1xf32> to vector<8x1xf32>
    %cst_22 = arith.constant dense<0xFF800000> : vector<8xf32>
    %29 = vector.multi_reduction <maximumf>, %26, %cst_22 [1] : vector<8x8xf32> to vector<8xf32>
    %30 = vector.shape_cast %29 : vector<8xf32> to vector<8x1xf32>
    %31 = arith.maximumf %28, %30 : vector<8x1xf32>
    %32 = arith.subf %28, %31 : vector<8x1xf32>
    %33 = math.exp %32 : vector<8x1xf32>
    %34 = vector.broadcast %31 : vector<8x1xf32> to vector<8x8xf32>
    %35 = arith.subf %26, %34 : vector<8x8xf32>
    %36 = math.exp %35 : vector<8x8xf32>
    %c0_23 = arith.constant 0 : index
    %c0_24 = arith.constant 0 : index
    %c0_25 = arith.constant 0 : index
    %37 = vector.load %arg17[%c0_23, %c0_24, %c0_25] : memref<2x8x1xf32, #tpu.memory_space<vmem>>, vector<1x8x1xf32>
    %38 = vector.shape_cast %37 : vector<1x8x1xf32> to vector<8x1xf32>
    %39 = arith.mulf %33, %38 : vector<8x1xf32>
    %cst_26 = arith.constant dense<0.000000e+00> : vector<8xf32>
    %40 = vector.multi_reduction <add>, %36, %cst_26 [1] : vector<8x8xf32> to vector<8xf32>
    %41 = vector.shape_cast %40 : vector<8xf32> to vector<8x1xf32>
    %42 = arith.addf %39, %41 : vector<8x1xf32>
    %c0_27 = arith.constant 0 : index
    %c0_28 = arith.constant 0 : index
    %c0_29 = arith.constant 0 : index
    %43 = vector.load %arg17[%c0_27, %c0_28, %c0_29] : memref<2x8x1xf32, #tpu.memory_space<vmem>>, vector<1x8x1xf32>
    %44 = vector.shape_cast %43 : vector<1x8x1xf32> to vector<8x1xf32>
    %45 = vector.shape_cast %42 : vector<8x1xf32> to vector<1x8x1xf32>
    tpu.vector_store %arg17[%c0_27, %c0_28, %c0_29], %45 {strides = array<i32>} : memref<2x8x1xf32, #tpu.memory_space<vmem>>, vector<1x8x1xf32>,
    %46 = arith.truncf %36 : vector<8x8xf32> to vector<8x8xbf16>
    %47 = vector.extract_strided_slice %23 {offsets = [0, 0], sizes = [8, 16], strides = [1, 1]} : vector<8x32xbf16> to vector<8x16xbf16>
    %cst_30 = arith.constant dense<0.000000e+00> : vector<8x16xf32>
    %48 = tpu.matmul %46, %47, %cst_30 {dimension_numbers = #tpu.dot_dimension_numbers<[1], [0], [0], [1], [0, 0, 1, 1], [], []>} : vector<8x8xbf16>, vector<8x16xbf16>, vector<8x16xf32> -> vector<8x16xf32>
    %c0_31 = arith.constant 0 : index
    %c0_32 = arith.constant 0 : index
    %49 = vector.load %arg18[%c0_31, %c0_32] : memref<8x32xf32, #tpu.memory_space<vmem>>, vector<8x16xf32>
    %50 = vector.broadcast %33 : vector<8x1xf32> to vector<8x16xf32>
    %51 = arith.mulf %50, %49 : vector<8x16xf32>
    %52 = arith.addf %51, %48 : vector<8x16xf32>
    %c0_33 = arith.constant 0 : index
    %c0_34 = arith.constant 0 : index
    %53 = vector.load %arg18[%c0_33, %c0_34] : memref<8x32xf32, #tpu.memory_space<vmem>>, vector<8x16xf32>
    tpu.vector_store %arg18[%c0_33, %c0_34], %52 {strides = array<i32>} : memref<8x32xf32, #tpu.memory_space<vmem>>, vector<8x16xf32>,
    %c0_35 = arith.constant 0 : index
    %c0_36 = arith.constant 0 : index
    %c0_37 = arith.constant 0 : index
    %54 = vector.load %arg16[%c0_35, %c0_36, %c0_37] : memref<2x8x1xf32, #tpu.memory_space<vmem>>, vector<1x8x1xf32>
    %55 = vector.shape_cast %54 : vector<1x8x1xf32> to vector<8x1xf32>
    %56 = vector.shape_cast %31 : vector<8x1xf32> to vector<1x8x1xf32>
    tpu.vector_store %arg16[%c0_35, %c0_36, %c0_37], %56 {strides = array<i32>} : memref<2x8x1xf32, #tpu.memory_space<vmem>>, vector<1x8x1xf32>,
    %57 = vector.extract_strided_slice %4 {offsets = [0, 16], sizes = [8, 16], strides = [1, 1]} : vector<8x32xbf16> to vector<8x16xbf16>
    %58 = vector.extract_strided_slice %16 {offsets = [0, 16], sizes = [8, 16], strides = [1, 1]} : vector<8x32xbf16> to vector<8x16xbf16>
    %cst_38 = arith.constant dense<0.000000e+00> : vector<8x8xf32>
    %59 = tpu.matmul %57, %58, %cst_38 {dimension_numbers = #tpu.dot_dimension_numbers<[1], [1], [0], [0], [0, 0, 1, 0], [], []>} : vector<8x16xbf16>, vector<8x16xbf16>, vector<8x8xf32> -> vector<8x8xf32>
    %c1 = arith.constant 1 : index
    %c0_39 = arith.constant 0 : index
    %c0_40 = arith.constant 0 : index
    %60 = vector.load %arg16[%c1, %c0_39, %c0_40] : memref<2x8x1xf32, #tpu.memory_space<vmem>>, vector<1x8x1xf32>
    %61 = vector.shape_cast %60 : vector<1x8x1xf32> to vector<8x1xf32>
    %cst_41 = arith.constant dense<0xFF800000> : vector<8xf32>
    %62 = vector.multi_reduction <maximumf>, %59, %cst_41 [1] : vector<8x8xf32> to vector<8xf32>
    %63 = vector.shape_cast %62 : vector<8xf32> to vector<8x1xf32>
    %64 = arith.maximumf %61, %63 : vector<8x1xf32>
    %65 = arith.subf %61, %64 : vector<8x1xf32>
    %66 = math.exp %65 : vector<8x1xf32>
    %67 = vector.broadcast %64 : vector<8x1xf32> to vector<8x8xf32>
    %68 = arith.subf %59, %67 : vector<8x8xf32>
    %69 = math.exp %68 : vector<8x8xf32>
    %c1_42 = arith.constant 1 : index
    %c0_43 = arith.constant 0 : index
    %c0_44 = arith.constant 0 : index
    %70 = vector.load %arg17[%c1_42, %c0_43, %c0_44] : memref<2x8x1xf32, #tpu.memory_space<vmem>>, vector<1x8x1xf32>
    %71 = vector.shape_cast %70 : vector<1x8x1xf32> to vector<8x1xf32>
    %72 = arith.mulf %66, %71 : vector<8x1xf32>
    %cst_45 = arith.constant dense<0.000000e+00> : vector<8xf32>
    %73 = vector.multi_reduction <add>, %69, %cst_45 [1] : vector<8x8xf32> to vector<8xf32>
    %74 = vector.shape_cast %73 : vector<8xf32> to vector<8x1xf32>
    %75 = arith.addf %72, %74 : vector<8x1xf32>
    %c1_46 = arith.constant 1 : index
    %c0_47 = arith.constant 0 : index
    %c0_48 = arith.constant 0 : index
    %76 = vector.load %arg17[%c1_46, %c0_47, %c0_48] : memref<2x8x1xf32, #tpu.memory_space<vmem>>, vector<1x8x1xf32>
    %77 = vector.shape_cast %76 : vector<1x8x1xf32> to vector<8x1xf32>
    %78 = vector.shape_cast %75 : vector<8x1xf32> to vector<1x8x1xf32>
    tpu.vector_store %arg17[%c1_46, %c0_47, %c0_48], %78 {strides = array<i32>} : memref<2x8x1xf32, #tpu.memory_space<vmem>>, vector<1x8x1xf32>,
    %79 = arith.truncf %69 : vector<8x8xf32> to vector<8x8xbf16>
    %80 = vector.extract_strided_slice %23 {offsets = [0, 16], sizes = [8, 16], strides = [1, 1]} : vector<8x32xbf16> to vector<8x16xbf16>
    %cst_49 = arith.constant dense<0.000000e+00> : vector<8x16xf32>
    %81 = tpu.matmul %79, %80, %cst_49 {dimension_numbers = #tpu.dot_dimension_numbers<[1], [0], [0], [1], [0, 0, 1, 1], [], []>} : vector<8x8xbf16>, vector<8x16xbf16>, vector<8x16xf32> -> vector<8x16xf32>
    %c0_50 = arith.constant 0 : index
    %c16 = arith.constant 16 : index
    %82 = vector.load %arg18[%c0_50, %c16] : memref<8x32xf32, #tpu.memory_space<vmem>>, vector<8x16xf32>
    %83 = vector.broadcast %66 : vector<8x1xf32> to vector<8x16xf32>
    %84 = arith.mulf %83, %82 : vector<8x16xf32>
    %85 = arith.addf %84, %81 : vector<8x16xf32>
    %c0_51 = arith.constant 0 : index
    %c16_52 = arith.constant 16 : index
    %86 = vector.load %arg18[%c0_51, %c16_52] : memref<8x32xf32, #tpu.memory_space<vmem>>, vector<8x16xf32>
    tpu.vector_store %arg18[%c0_51, %c16_52], %85 {strides = array<i32>} : memref<8x32xf32, #tpu.memory_space<vmem>>, vector<8x16xf32>,
    %c1_53 = arith.constant 1 : index
    %c0_54 = arith.constant 0 : index
    %c0_55 = arith.constant 0 : index
    %87 = vector.load %arg16[%c1_53, %c0_54, %c0_55] : memref<2x8x1xf32, #tpu.memory_space<vmem>>, vector<1x8x1xf32>
    %88 = vector.shape_cast %87 : vector<1x8x1xf32> to vector<8x1xf32>
    %89 = vector.shape_cast %64 : vector<8x1xf32> to vector<1x8x1xf32>
    tpu.vector_store %arg16[%c1_53, %c0_54, %c0_55], %89 {strides = array<i32>} : memref<2x8x1xf32, #tpu.memory_space<vmem>>, vector<1x8x1xf32>,
    %c0_i32_56 = arith.constant 0 : i32
    %90 = arith.cmpi eq, %arg2, %c0_i32_56 : i32
    %91 = arith.extui %90 : i1 to i32
    %c0_i32_57 = arith.constant 0 : i32
    %92 = arith.cmpi ne, %91, %c0_i32_57 : i32
    scf.if %92 {
      %c0_58 = arith.constant 0 : index
      %c0_59 = arith.constant 0 : index
      %c0_60 = arith.constant 0 : index
      %93 = vector.load %arg17[%c0_58, %c0_59, %c0_60] : memref<2x8x1xf32, #tpu.memory_space<vmem>>, vector<1x8x1xf32>
      %94 = vector.shape_cast %93 : vector<1x8x1xf32> to vector<8x1xf32>
      %95 = tpu.reciprocal %94 {approx = true} : vector<8x1xf32> -> vector<8x1xf32>
      %96 = vector.shape_cast %95 : vector<8x1xf32> to vector<8x1xf32>
      %97 = vector.broadcast %96 : vector<8x1xf32> to vector<8x16xf32>
      %c1_61 = arith.constant 1 : index
      %c0_62 = arith.constant 0 : index
      %c0_63 = arith.constant 0 : index
      %98 = vector.load %arg17[%c1_61, %c0_62, %c0_63] : memref<2x8x1xf32, #tpu.memory_space<vmem>>, vector<1x8x1xf32>
      %99 = vector.shape_cast %98 : vector<1x8x1xf32> to vector<8x1xf32>
      %100 = tpu.reciprocal %99 {approx = true} : vector<8x1xf32> -> vector<8x1xf32>
      %101 = vector.shape_cast %100 : vector<8x1xf32> to vector<8x1xf32>
      %102 = vector.broadcast %101 : vector<8x1xf32> to vector<8x16xf32>
      %103 = tpu.concatenate %97, %102 in 1 : vector<8x16xf32>, vector<8x16xf32> -> vector<8x32xf32>
      %c0_64 = arith.constant 0 : index
      %c0_65 = arith.constant 0 : index
      %104 = vector.load %arg18[%c0_64, %c0_65] : memref<8x32xf32, #tpu.memory_space<vmem>>, vector<8x32xf32>
      %105 = arith.mulf %104, %103 : vector<8x32xf32>
      %106 = arith.truncf %105 : vector<8x32xf32> to vector<8x32xbf16>
      %c0_66 = arith.constant 0 : index
      %c0_67 = arith.constant 0 : index
      %107 = vector.load %arg11[%c0_66, %c0_67] : memref<32x32xbf16, #tpu.memory_space<vmem>>, vector<32x32xbf16>
      %cst_68 = arith.constant dense<0.000000e+00> : vector<8x32xf32>
      %108 = tpu.matmul %106, %107, %cst_68 {dimension_numbers = #tpu.dot_dimension_numbers<[1], [0], [0], [1], [0, 0, 1, 1], [], []>} : vector<8x32xbf16>, vector<32x32xbf16>, vector<8x32xf32> -> vector<8x32xf32>
      %c0_69 = arith.constant 0 : index
      %c0_70 = arith.constant 0 : index
      %109 = vector.load %arg12[%c0_69, %c0_70] : memref<1x32xf32, #tpu.memory_space<vmem>>, vector<1x32xf32>
      %110 = vector.broadcast %109 : vector<1x32xf32> to vector<8x32xf32>
      %111 = arith.addf %108, %110 : vector<8x32xf32>
      %c0_71 = arith.constant 0 : index
      %c0_72 = arith.constant 0 : index
      %c0_73 = arith.constant 0 : index
      %112 = vector.load %arg6[%c0_71, %c0_72, %c0_73] : memref<1x8x32xf32, #tpu.memory_space<vmem>>, vector<1x8x32xf32>
      %113 = vector.shape_cast %112 : vector<1x8x32xf32> to vector<8x32xf32>
      %114 = arith.addf %113, %111 : vector<8x32xf32>
      %cst_74 = arith.constant dense<0.000000e+00> : vector<8xf32>
      %115 = vector.multi_reduction <add>, %114, %cst_74 [1] : vector<8x32xf32> to vector<8xf32>
      %116 = vector.shape_cast %115 : vector<8xf32> to vector<8x1xf32>
      %cst_75 = arith.constant 3.200000e+01 : f32
      %117 = vector.broadcast %cst_75 : f32 to vector<8x1xf32>
      %118 = arith.divf %116, %117 : vector<8x1xf32>
      %119 = vector.broadcast %118 : vector<8x1xf32> to vector<8x32xf32>
      %120 = arith.subf %114, %119 : vector<8x32xf32>
      %121 = arith.mulf %120, %120 : vector<8x32xf32>
      %cst_76 = arith.constant dense<0.000000e+00> : vector<8xf32>
      %122 = vector.multi_reduction <add>, %121, %cst_76 [1] : vector<8x32xf32> to vector<8xf32>
      %123 = vector.shape_cast %122 : vector<8xf32> to vector<8x1xf32>
      %cst_77 = arith.constant 3.200000e+01 : f32
      %124 = vector.broadcast %cst_77 : f32 to vector<8x1xf32>
      %125 = arith.divf %123, %124 : vector<8x1xf32>
      %cst_78 = arith.constant 9.99999974E-6 : f32
      %126 = vector.broadcast %cst_78 : f32 to vector<8x1xf32>
      %127 = arith.addf %125, %126 : vector<8x1xf32>
      %128 = math.rsqrt %127 : vector<8x1xf32>
      %129 = vector.broadcast %128 : vector<8x1xf32> to vector<8x32xf32>
      %130 = arith.mulf %120, %129 : vector<8x32xf32>
      %c0_79 = arith.constant 0 : index
      %c0_80 = arith.constant 0 : index
      %131 = vector.load %arg13[%c0_79, %c0_80] : memref<1x32xf32, #tpu.memory_space<vmem>>, vector<1x32xf32>
      %132 = vector.broadcast %131 : vector<1x32xf32> to vector<8x32xf32>
      %133 = arith.mulf %130, %132 : vector<8x32xf32>
      %c0_81 = arith.constant 0 : index
      %c0_82 = arith.constant 0 : index
      %134 = vector.load %arg14[%c0_81, %c0_82] : memref<1x32xf32, #tpu.memory_space<vmem>>, vector<1x32xf32>
      %135 = vector.broadcast %134 : vector<1x32xf32> to vector<8x32xf32>
      %136 = arith.addf %133, %135 : vector<8x32xf32>
      %137 = arith.truncf %136 : vector<8x32xf32> to vector<8x32xbf16>
      %c0_83 = arith.constant 0 : index
      %c0_84 = arith.constant 0 : index
      %c0_85 = arith.constant 0 : index
      %138 = vector.load %arg15[%c0_83, %c0_84, %c0_85] : memref<1x8x32xbf16, #tpu.memory_space<vmem>>, vector<1x8x32xbf16>
      %139 = vector.shape_cast %138 : vector<1x8x32xbf16> to vector<8x32xbf16>
      %140 = vector.shape_cast %137 : vector<8x32xbf16> to vector<1x8x32xbf16>
      tpu.vector_store %arg15[%c0_83, %c0_84, %c0_85], %140 {strides = array<i32>} : memref<1x8x32xbf16, #tpu.memory_space<vmem>>, vector<1x8x32xbf16>,
    } else {
    }
    return
  }
  func.func @transform_0(%arg0: i32, %arg1: i32, %arg2: i32) -> (i32, i32, i32) {
    %c0_i32 = arith.constant 0 : i32
    %c0_i32_0 = arith.constant 0 : i32
    return %arg0, %arg1, %c0_i32 : i32, i32, i32
  }
  func.func @transform_1(%arg0: i32, %arg1: i32, %arg2: i32) -> (i32, i32, i32) {
    %c0_i32 = arith.constant 0 : i32
    %c0_i32_0 = arith.constant 0 : i32
    return %arg0, %arg2, %c0_i32 : i32, i32, i32
  }
  func.func @transform_2(%arg0: i32, %arg1: i32, %arg2: i32) -> (i32, i32, i32) {
    %c0_i32 = arith.constant 0 : i32
    %c0_i32_0 = arith.constant 0 : i32
    return %arg0, %arg2, %c0_i32 : i32, i32, i32
  }
  func.func @transform_3(%arg0: i32, %arg1: i32, %arg2: i32) -> (i32, i32, i32) {
    %c0_i32 = arith.constant 0 : i32
    %c0_i32_0 = arith.constant 0 : i32
    return %arg0, %arg1, %c0_i32 : i32, i32, i32
  }
  func.func @transform_4(%arg0: i32, %arg1: i32, %arg2: i32) -> (i32, i32) {
    %c0_i32 = arith.constant 0 : i32
    %c0_i32_0 = arith.constant 0 : i32
    %c0_i32_1 = arith.constant 0 : i32
    return %c0_i32, %c0_i32_0 : i32, i32
  }
  func.func @transform_5(%arg0: i32, %arg1: i32, %arg2: i32) -> (i32, i32) {
    %c0_i32 = arith.constant 0 : i32
    %c0_i32_0 = arith.constant 0 : i32
    %c0_i32_1 = arith.constant 0 : i32
    return %c0_i32, %c0_i32_0 : i32, i32
  }
  func.func @transform_6(%arg0: i32, %arg1: i32, %arg2: i32) -> (i32, i32) {
    %c0_i32 = arith.constant 0 : i32
    %c0_i32_0 = arith.constant 0 : i32
    %c0_i32_1 = arith.constant 0 : i32
    return %c0_i32, %c0_i32_0 : i32, i32
  }
  func.func @transform_7(%arg0: i32, %arg1: i32, %arg2: i32) -> (i32, i32) {
    %c0_i32 = arith.constant 0 : i32
    %c0_i32_0 = arith.constant 0 : i32
    %c0_i32_1 = arith.constant 0 : i32
    return %c0_i32, %c0_i32_0 : i32, i32
  }
  func.func @transform_8(%arg0: i32, %arg1: i32, %arg2: i32) -> (i32, i32) {
    %c0_i32 = arith.constant 0 : i32
    %c0_i32_0 = arith.constant 0 : i32
    %c0_i32_1 = arith.constant 0 : i32
    return %c0_i32, %c0_i32_0 : i32, i32
  }
  func.func @transform_9(%arg0: i32, %arg1: i32, %arg2: i32) -> (i32, i32) {
    %c0_i32 = arith.constant 0 : i32
    %c0_i32_0 = arith.constant 0 : i32
    %c0_i32_1 = arith.constant 0 : i32
    return %c0_i32, %c0_i32_0 : i32, i32
  }
  func.func @transform_10(%arg0: i32, %arg1: i32, %arg2: i32) -> (i32, i32) {
    %c0_i32 = arith.constant 0 : i32
    %c0_i32_0 = arith.constant 0 : i32
    %c0_i32_1 = arith.constant 0 : i32
    return %c0_i32, %c0_i32_0 : i32, i32
  }
  func.func @transform_11(%arg0: i32, %arg1: i32, %arg2: i32) -> (i32, i32) {
    %c0_i32 = arith.constant 0 : i32
    %c0_i32_0 = arith.constant 0 : i32
    %c0_i32_1 = arith.constant 0 : i32
    return %c0_i32, %c0_i32_0 : i32, i32
  }
  func.func @transform_12(%arg0: i32, %arg1: i32, %arg2: i32) -> (i32, i32, i32) {
    %c0_i32 = arith.constant 0 : i32
    %c0_i32_0 = arith.constant 0 : i32
    return %arg0, %arg1, %c0_i32 : i32, i32, i32
  }
}

module attributes {stable_mosaic.version = 11 : i64} {
  func.func @_flash_fused_kernel(%arg0: i32, %arg1: i32, %arg2: i32, %arg3: memref<1x8x32xbf16, #tpu.memory_space<vmem>>, %arg4: memref<1x16x32xf32, #tpu.memory_space<vmem>>, %arg5: memref<1x16x32xf32, #tpu.memory_space<vmem>>, %arg6: memref<1x8x32xbf16, #tpu.memory_space<vmem>>, %arg7: memref<32x32xbf16, #tpu.memory_space<vmem>>, %arg8: memref<1x32xf32, #tpu.memory_space<vmem>>, %arg9: memref<32x32xbf16, #tpu.memory_space<vmem>>, %arg10: memref<1x32xf32, #tpu.memory_space<vmem>>, %arg11: memref<32x32xbf16, #tpu.memory_space<vmem>>, %arg12: memref<1x32xf32, #tpu.memory_space<vmem>>, %arg13: memref<1x32xf32, #tpu.memory_space<vmem>>, %arg14: memref<1x32xf32, #tpu.memory_space<vmem>>, %arg15: memref<1x8x32xbf16, #tpu.memory_space<vmem>>, %arg16: memref<2x8x1xf32, #tpu.memory_space<vmem>>, %arg17: memref<2x8x1xf32, #tpu.memory_space<vmem>>, %arg18: memref<8x32xf32, #tpu.memory_space<vmem>>) attributes {dimension_semantics = [#tpu.dimension_semantics<parallel>, #tpu.dimension_semantics<parallel>, #tpu.dimension_semantics<arbitrary>], iteration_bounds = array<i64: 2, 1, 1>, scalar_prefetch = 0 : i64, scratch_operands = 3 : i64, tpu.core_type = #tpu.core_type<tc>, window_params = [{transform_indices = @transform_0, window_bounds = array<i64: 1, 8, 32>}, {transform_indices = @transform_1, window_bounds = array<i64: 1, 16, 32>}, {transform_indices = @transform_2, window_bounds = array<i64: 1, 16, 32>}, {transform_indices = @transform_3, window_bounds = array<i64: 1, 8, 32>}, {pipeline_mode = #tpu.pipeline_mode<synchronous>, transform_indices = @transform_4, window_bounds = array<i64: 32, 32>}, {pipeline_mode = #tpu.pipeline_mode<synchronous>, transform_indices = @transform_5, window_bounds = array<i64: 1, 32>}, {pipeline_mode = #tpu.pipeline_mode<synchronous>, transform_indices = @transform_6, window_bounds = array<i64: 32, 32>}, {pipeline_mode = #tpu.pipeline_mode<synchronous>, transform_indices = @transform_7, window_bounds = array<i64: 1, 32>}, {pipeline_mode = #tpu.pipeline_mode<synchronous>, transform_indices = @transform_8, window_bounds = array<i64: 32, 32>}, {pipeline_mode = #tpu.pipeline_mode<synchronous>, transform_indices = @transform_9, window_bounds = array<i64: 1, 32>}, {pipeline_mode = #tpu.pipeline_mode<synchronous>, transform_indices = @transform_10, window_bounds = array<i64: 1, 32>}, {pipeline_mode = #tpu.pipeline_mode<synchronous>, transform_indices = @transform_11, window_bounds = array<i64: 1, 32>}, {transform_indices = @transform_12, window_bounds = array<i64: 1, 8, 32>}]} {
    %c0_i32 = arith.constant 0 : i32
    %0 = arith.cmpi eq, %arg2, %c0_i32 : i32
    %1 = arith.extui %0 : i1 to i32
    %c0_i32_0 = arith.constant 0 : i32
    %2 = arith.cmpi ne, %1, %c0_i32_0 : i32
    scf.if %2 {
      %cst_58 = arith.constant 0xFF800000 : f32
      %93 = vector.broadcast %cst_58 : f32 to vector<2x8x1xf32>
      %c0_59 = arith.constant 0 : index
      %c0_60 = arith.constant 0 : index
      %c0_61 = arith.constant 0 : index
      %94 = vector.load %arg16[%c0_59, %c0_60, %c0_61] : memref<2x8x1xf32, #tpu.memory_space<vmem>>, vector<2x8x1xf32>
      tpu.vector_store %arg16[%c0_59, %c0_60, %c0_61], %93 {strides = array<i32>} : memref<2x8x1xf32, #tpu.memory_space<vmem>>, vector<2x8x1xf32>,
      %cst_62 = arith.constant 0.000000e+00 : f32
      %95 = vector.broadcast %cst_62 : f32 to vector<2x8x1xf32>
      %c0_63 = arith.constant 0 : index
      %c0_64 = arith.constant 0 : index
      %c0_65 = arith.constant 0 : index
      %96 = vector.load %arg17[%c0_63, %c0_64, %c0_65] : memref<2x8x1xf32, #tpu.memory_space<vmem>>, vector<2x8x1xf32>
      tpu.vector_store %arg17[%c0_63, %c0_64, %c0_65], %95 {strides = array<i32>} : memref<2x8x1xf32, #tpu.memory_space<vmem>>, vector<2x8x1xf32>,
      %cst_66 = arith.constant 0.000000e+00 : f32
      %97 = vector.broadcast %cst_66 : f32 to vector<8x32xf32>
      %c0_67 = arith.constant 0 : index
      %c0_68 = arith.constant 0 : index
      %98 = vector.load %arg18[%c0_67, %c0_68] : memref<8x32xf32, #tpu.memory_space<vmem>>, vector<8x32xf32>
      tpu.vector_store %arg18[%c0_67, %c0_68], %97 {strides = array<i32>} : memref<8x32xf32, #tpu.memory_space<vmem>>, vector<8x32xf32>,
    } else {
    }
    %c0 = arith.constant 0 : index
    %c0_1 = arith.constant 0 : index
    %c0_2 = arith.constant 0 : index
    %3 = vector.load %arg3[%c0, %c0_1, %c0_2] : memref<1x8x32xbf16, #tpu.memory_space<vmem>>, vector<1x8x32xbf16>
    %4 = vector.shape_cast %3 : vector<1x8x32xbf16> to vector<8x32xbf16>
    %c0_3 = arith.constant 0 : index
    %c0_4 = arith.constant 0 : index
    %c0_5 = arith.constant 0 : index
    %5 = vector.load %arg4[%c0_3, %c0_4, %c0_5] : memref<1x16x32xf32, #tpu.memory_space<vmem>>, vector<1x16x32xf32>
    %6 = vector.shape_cast %5 : vector<1x16x32xf32> to vector<16x32xf32>
    %c0_6 = arith.constant 0 : index
    %c0_7 = arith.constant 0 : index
    %c0_8 = arith.constant 0 : index
    %7 = vector.load %arg5[%c0_6, %c0_7, %c0_8] : memref<1x16x32xf32, #tpu.memory_space<vmem>>, vector<1x16x32xf32>
    %8 = vector.shape_cast %7 : vector<1x16x32xf32> to vector<16x32xf32>
    %9 = arith.addf %6, %8 : vector<16x32xf32>
    %10 = arith.truncf %9 : vector<16x32xf32> to vector<16x32xbf16>
    %c0_9 = arith.constant 0 : index
    %c0_10 = arith.constant 0 : index
    %11 = vector.load %arg7[%c0_9, %c0_10] : memref<32x32xbf16, #tpu.memory_space<vmem>>, vector<32x32xbf16>
    %cst = arith.constant dense<0.000000e+00> : vector<16x32xf32>
    %12 = tpu.matmul %10, %11, %cst {dimension_numbers = #tpu.dot_dimension_numbers<[1], [0], [0], [1], [0, 0, 1, 1], [], []>} : vector<16x32xbf16>, vector<32x32xbf16>, vector<16x32xf32> -> vector<16x32xf32>
    %c0_11 = arith.constant 0 : index
    %c0_12 = arith.constant 0 : index
    %13 = vector.load %arg8[%c0_11, %c0_12] : memref<1x32xf32, #tpu.memory_space<vmem>>, vector<1x32xf32>
    %14 = vector.broadcast %13 : vector<1x32xf32> to vector<16x32xf32>
    %15 = arith.addf %12, %14 : vector<16x32xf32>
    %16 = arith.truncf %15 : vector<16x32xf32> to vector<16x32xbf16>
    %17 = arith.truncf %6 : vector<16x32xf32> to vector<16x32xbf16>
    %c0_13 = arith.constant 0 : index
    %c0_14 = arith.constant 0 : index
    %18 = vector.load %arg9[%c0_13, %c0_14] : memref<32x32xbf16, #tpu.memory_space<vmem>>, vector<32x32xbf16>
    %cst_15 = arith.constant dense<0.000000e+00> : vector<16x32xf32>
    %19 = tpu.matmul %17, %18, %cst_15 {dimension_numbers = #tpu.dot_dimension_numbers<[1], [0], [0], [1], [0, 0, 1, 1], [], []>} : vector<16x32xbf16>, vector<32x32xbf16>, vector<16x32xf32> -> vector<16x32xf32>
    %c0_16 = arith.constant 0 : index
    %c0_17 = arith.constant 0 : index
    %20 = vector.load %arg10[%c0_16, %c0_17] : memref<1x32xf32, #tpu.memory_space<vmem>>, vector<1x32xf32>
    %21 = vector.broadcast %20 : vector<1x32xf32> to vector<16x32xf32>
    %22 = arith.addf %19, %21 : vector<16x32xf32>
    %23 = arith.truncf %22 : vector<16x32xf32> to vector<16x32xbf16>
    %24 = vector.extract_strided_slice %4 {offsets = [0, 0], sizes = [8, 16], strides = [1, 1]} : vector<8x32xbf16> to vector<8x16xbf16>
    %25 = vector.extract_strided_slice %16 {offsets = [0, 0], sizes = [16, 16], strides = [1, 1]} : vector<16x32xbf16> to vector<16x16xbf16>
    %cst_18 = arith.constant dense<0.000000e+00> : vector<8x16xf32>
    %26 = tpu.matmul %24, %25, %cst_18 {dimension_numbers = #tpu.dot_dimension_numbers<[1], [1], [0], [0], [0, 0, 1, 0], [], []>} : vector<8x16xbf16>, vector<16x16xbf16>, vector<8x16xf32> -> vector<8x16xf32>
    %c0_19 = arith.constant 0 : index
    %c0_20 = arith.constant 0 : index
    %c0_21 = arith.constant 0 : index
    %27 = vector.load %arg16[%c0_19, %c0_20, %c0_21] : memref<2x8x1xf32, #tpu.memory_space<vmem>>, vector<1x8x1xf32>
    %28 = vector.shape_cast %27 : vector<1x8x1xf32> to vector<8x1xf32>
    %cst_22 = arith.constant dense<0xFF800000> : vector<8xf32>
    %29 = vector.multi_reduction <maximumf>, %26, %cst_22 [1] : vector<8x16xf32> to vector<8xf32>
    %30 = vector.shape_cast %29 : vector<8xf32> to vector<8x1xf32>
    %31 = arith.maximumf %28, %30 : vector<8x1xf32>
    %32 = arith.subf %28, %31 : vector<8x1xf32>
    %33 = math.exp %32 : vector<8x1xf32>
    %34 = vector.broadcast %31 : vector<8x1xf32> to vector<8x16xf32>
    %35 = arith.subf %26, %34 : vector<8x16xf32>
    %36 = math.exp %35 : vector<8x16xf32>
    %c0_23 = arith.constant 0 : index
    %c0_24 = arith.constant 0 : index
    %c0_25 = arith.constant 0 : index
    %37 = vector.load %arg17[%c0_23, %c0_24, %c0_25] : memref<2x8x1xf32, #tpu.memory_space<vmem>>, vector<1x8x1xf32>
    %38 = vector.shape_cast %37 : vector<1x8x1xf32> to vector<8x1xf32>
    %39 = arith.mulf %33, %38 : vector<8x1xf32>
    %cst_26 = arith.constant dense<0.000000e+00> : vector<8xf32>
    %40 = vector.multi_reduction <add>, %36, %cst_26 [1] : vector<8x16xf32> to vector<8xf32>
    %41 = vector.shape_cast %40 : vector<8xf32> to vector<8x1xf32>
    %42 = arith.addf %39, %41 : vector<8x1xf32>
    %c0_27 = arith.constant 0 : index
    %c0_28 = arith.constant 0 : index
    %c0_29 = arith.constant 0 : index
    %43 = vector.load %arg17[%c0_27, %c0_28, %c0_29] : memref<2x8x1xf32, #tpu.memory_space<vmem>>, vector<1x8x1xf32>
    %44 = vector.shape_cast %43 : vector<1x8x1xf32> to vector<8x1xf32>
    %45 = vector.shape_cast %42 : vector<8x1xf32> to vector<1x8x1xf32>
    tpu.vector_store %arg17[%c0_27, %c0_28, %c0_29], %45 {strides = array<i32>} : memref<2x8x1xf32, #tpu.memory_space<vmem>>, vector<1x8x1xf32>,
    %46 = arith.truncf %36 : vector<8x16xf32> to vector<8x16xbf16>
    %47 = vector.extract_strided_slice %23 {offsets = [0, 0], sizes = [16, 16], strides = [1, 1]} : vector<16x32xbf16> to vector<16x16xbf16>
    %cst_30 = arith.constant dense<0.000000e+00> : vector<8x16xf32>
    %48 = tpu.matmul %46, %47, %cst_30 {dimension_numbers = #tpu.dot_dimension_numbers<[1], [0], [0], [1], [0, 0, 1, 1], [], []>} : vector<8x16xbf16>, vector<16x16xbf16>, vector<8x16xf32> -> vector<8x16xf32>
    %c0_31 = arith.constant 0 : index
    %c0_32 = arith.constant 0 : index
    %49 = vector.load %arg18[%c0_31, %c0_32] : memref<8x32xf32, #tpu.memory_space<vmem>>, vector<8x16xf32>
    %50 = vector.broadcast %33 : vector<8x1xf32> to vector<8x16xf32>
    %51 = arith.mulf %50, %49 : vector<8x16xf32>
    %52 = arith.addf %51, %48 : vector<8x16xf32>
    %c0_33 = arith.constant 0 : index
    %c0_34 = arith.constant 0 : index
    %53 = vector.load %arg18[%c0_33, %c0_34] : memref<8x32xf32, #tpu.memory_space<vmem>>, vector<8x16xf32>
    tpu.vector_store %arg18[%c0_33, %c0_34], %52 {strides = array<i32>} : memref<8x32xf32, #tpu.memory_space<vmem>>, vector<8x16xf32>,
    %c0_35 = arith.constant 0 : index
    %c0_36 = arith.constant 0 : index
    %c0_37 = arith.constant 0 : index
    %54 = vector.load %arg16[%c0_35, %c0_36, %c0_37] : memref<2x8x1xf32, #tpu.memory_space<vmem>>, vector<1x8x1xf32>
    %55 = vector.shape_cast %54 : vector<1x8x1xf32> to vector<8x1xf32>
    %56 = vector.shape_cast %31 : vector<8x1xf32> to vector<1x8x1xf32>
    tpu.vector_store %arg16[%c0_35, %c0_36, %c0_37], %56 {strides = array<i32>} : memref<2x8x1xf32, #tpu.memory_space<vmem>>, vector<1x8x1xf32>,
    %57 = vector.extract_strided_slice %4 {offsets = [0, 16], sizes = [8, 16], strides = [1, 1]} : vector<8x32xbf16> to vector<8x16xbf16>
    %58 = vector.extract_strided_slice %16 {offsets = [0, 16], sizes = [16, 16], strides = [1, 1]} : vector<16x32xbf16> to vector<16x16xbf16>
    %cst_38 = arith.constant dense<0.000000e+00> : vector<8x16xf32>
    %59 = tpu.matmul %57, %58, %cst_38 {dimension_numbers = #tpu.dot_dimension_numbers<[1], [1], [0], [0], [0, 0, 1, 0], [], []>} : vector<8x16xbf16>, vector<16x16xbf16>, vector<8x16xf32> -> vector<8x16xf32>
    %c1 = arith.constant 1 : index
    %c0_39 = arith.constant 0 : index
    %c0_40 = arith.constant 0 : index
    %60 = vector.load %arg16[%c1, %c0_39, %c0_40] : memref<2x8x1xf32, #tpu.memory_space<vmem>>, vector<1x8x1xf32>
    %61 = vector.shape_cast %60 : vector<1x8x1xf32> to vector<8x1xf32>
    %cst_41 = arith.constant dense<0xFF800000> : vector<8xf32>
    %62 = vector.multi_reduction <maximumf>, %59, %cst_41 [1] : vector<8x16xf32> to vector<8xf32>
    %63 = vector.shape_cast %62 : vector<8xf32> to vector<8x1xf32>
    %64 = arith.maximumf %61, %63 : vector<8x1xf32>
    %65 = arith.subf %61, %64 : vector<8x1xf32>
    %66 = math.exp %65 : vector<8x1xf32>
    %67 = vector.broadcast %64 : vector<8x1xf32> to vector<8x16xf32>
    %68 = arith.subf %59, %67 : vector<8x16xf32>
    %69 = math.exp %68 : vector<8x16xf32>
    %c1_42 = arith.constant 1 : index
    %c0_43 = arith.constant 0 : index
    %c0_44 = arith.constant 0 : index
    %70 = vector.load %arg17[%c1_42, %c0_43, %c0_44] : memref<2x8x1xf32, #tpu.memory_space<vmem>>, vector<1x8x1xf32>
    %71 = vector.shape_cast %70 : vector<1x8x1xf32> to vector<8x1xf32>
    %72 = arith.mulf %66, %71 : vector<8x1xf32>
    %cst_45 = arith.constant dense<0.000000e+00> : vector<8xf32>
    %73 = vector.multi_reduction <add>, %69, %cst_45 [1] : vector<8x16xf32> to vector<8xf32>
    %74 = vector.shape_cast %73 : vector<8xf32> to vector<8x1xf32>
    %75 = arith.addf %72, %74 : vector<8x1xf32>
    %c1_46 = arith.constant 1 : index
    %c0_47 = arith.constant 0 : index
    %c0_48 = arith.constant 0 : index
    %76 = vector.load %arg17[%c1_46, %c0_47, %c0_48] : memref<2x8x1xf32, #tpu.memory_space<vmem>>, vector<1x8x1xf32>
    %77 = vector.shape_cast %76 : vector<1x8x1xf32> to vector<8x1xf32>
    %78 = vector.shape_cast %75 : vector<8x1xf32> to vector<1x8x1xf32>
    tpu.vector_store %arg17[%c1_46, %c0_47, %c0_48], %78 {strides = array<i32>} : memref<2x8x1xf32, #tpu.memory_space<vmem>>, vector<1x8x1xf32>,
    %79 = arith.truncf %69 : vector<8x16xf32> to vector<8x16xbf16>
    %80 = vector.extract_strided_slice %23 {offsets = [0, 16], sizes = [16, 16], strides = [1, 1]} : vector<16x32xbf16> to vector<16x16xbf16>
    %cst_49 = arith.constant dense<0.000000e+00> : vector<8x16xf32>
    %81 = tpu.matmul %79, %80, %cst_49 {dimension_numbers = #tpu.dot_dimension_numbers<[1], [0], [0], [1], [0, 0, 1, 1], [], []>} : vector<8x16xbf16>, vector<16x16xbf16>, vector<8x16xf32> -> vector<8x16xf32>
    %c0_50 = arith.constant 0 : index
    %c16 = arith.constant 16 : index
    %82 = vector.load %arg18[%c0_50, %c16] : memref<8x32xf32, #tpu.memory_space<vmem>>, vector<8x16xf32>
    %83 = vector.broadcast %66 : vector<8x1xf32> to vector<8x16xf32>
    %84 = arith.mulf %83, %82 : vector<8x16xf32>
    %85 = arith.addf %84, %81 : vector<8x16xf32>
    %c0_51 = arith.constant 0 : index
    %c16_52 = arith.constant 16 : index
    %86 = vector.load %arg18[%c0_51, %c16_52] : memref<8x32xf32, #tpu.memory_space<vmem>>, vector<8x16xf32>
    tpu.vector_store %arg18[%c0_51, %c16_52], %85 {strides = array<i32>} : memref<8x32xf32, #tpu.memory_space<vmem>>, vector<8x16xf32>,
    %c1_53 = arith.constant 1 : index
    %c0_54 = arith.constant 0 : index
    %c0_55 = arith.constant 0 : index
    %87 = vector.load %arg16[%c1_53, %c0_54, %c0_55] : memref<2x8x1xf32, #tpu.memory_space<vmem>>, vector<1x8x1xf32>
    %88 = vector.shape_cast %87 : vector<1x8x1xf32> to vector<8x1xf32>
    %89 = vector.shape_cast %64 : vector<8x1xf32> to vector<1x8x1xf32>
    tpu.vector_store %arg16[%c1_53, %c0_54, %c0_55], %89 {strides = array<i32>} : memref<2x8x1xf32, #tpu.memory_space<vmem>>, vector<1x8x1xf32>,
    %c0_i32_56 = arith.constant 0 : i32
    %90 = arith.cmpi eq, %arg2, %c0_i32_56 : i32
    %91 = arith.extui %90 : i1 to i32
    %c0_i32_57 = arith.constant 0 : i32
    %92 = arith.cmpi ne, %91, %c0_i32_57 : i32
    scf.if %92 {
      %c0_58 = arith.constant 0 : index
      %c0_59 = arith.constant 0 : index
      %c0_60 = arith.constant 0 : index
      %93 = vector.load %arg17[%c0_58, %c0_59, %c0_60] : memref<2x8x1xf32, #tpu.memory_space<vmem>>, vector<1x8x1xf32>
      %94 = vector.shape_cast %93 : vector<1x8x1xf32> to vector<8x1xf32>
      %95 = tpu.reciprocal %94 {approx = true} : vector<8x1xf32> -> vector<8x1xf32>
      %96 = vector.shape_cast %95 : vector<8x1xf32> to vector<8x1xf32>
      %97 = vector.broadcast %96 : vector<8x1xf32> to vector<8x16xf32>
      %c1_61 = arith.constant 1 : index
      %c0_62 = arith.constant 0 : index
      %c0_63 = arith.constant 0 : index
      %98 = vector.load %arg17[%c1_61, %c0_62, %c0_63] : memref<2x8x1xf32, #tpu.memory_space<vmem>>, vector<1x8x1xf32>
      %99 = vector.shape_cast %98 : vector<1x8x1xf32> to vector<8x1xf32>
      %100 = tpu.reciprocal %99 {approx = true} : vector<8x1xf32> -> vector<8x1xf32>
      %101 = vector.shape_cast %100 : vector<8x1xf32> to vector<8x1xf32>
      %102 = vector.broadcast %101 : vector<8x1xf32> to vector<8x16xf32>
      %103 = tpu.concatenate %97, %102 in 1 : vector<8x16xf32>, vector<8x16xf32> -> vector<8x32xf32>
      %c0_64 = arith.constant 0 : index
      %c0_65 = arith.constant 0 : index
      %104 = vector.load %arg18[%c0_64, %c0_65] : memref<8x32xf32, #tpu.memory_space<vmem>>, vector<8x32xf32>
      %105 = arith.mulf %104, %103 : vector<8x32xf32>
      %106 = arith.truncf %105 : vector<8x32xf32> to vector<8x32xbf16>
      %c0_66 = arith.constant 0 : index
      %c0_67 = arith.constant 0 : index
      %107 = vector.load %arg11[%c0_66, %c0_67] : memref<32x32xbf16, #tpu.memory_space<vmem>>, vector<32x32xbf16>
      %cst_68 = arith.constant dense<0.000000e+00> : vector<8x32xf32>
      %108 = tpu.matmul %106, %107, %cst_68 {dimension_numbers = #tpu.dot_dimension_numbers<[1], [0], [0], [1], [0, 0, 1, 1], [], []>} : vector<8x32xbf16>, vector<32x32xbf16>, vector<8x32xf32> -> vector<8x32xf32>
      %c0_69 = arith.constant 0 : index
      %c0_70 = arith.constant 0 : index
      %109 = vector.load %arg12[%c0_69, %c0_70] : memref<1x32xf32, #tpu.memory_space<vmem>>, vector<1x32xf32>
      %110 = vector.broadcast %109 : vector<1x32xf32> to vector<8x32xf32>
      %111 = arith.addf %108, %110 : vector<8x32xf32>
      %c0_71 = arith.constant 0 : index
      %c0_72 = arith.constant 0 : index
      %c0_73 = arith.constant 0 : index
      %112 = vector.load %arg6[%c0_71, %c0_72, %c0_73] : memref<1x8x32xbf16, #tpu.memory_space<vmem>>, vector<1x8x32xbf16>
      %113 = vector.shape_cast %112 : vector<1x8x32xbf16> to vector<8x32xbf16>
      %114 = arith.extf %113 : vector<8x32xbf16> to vector<8x32xf32>
      %115 = arith.addf %114, %111 : vector<8x32xf32>
      %cst_74 = arith.constant dense<0.000000e+00> : vector<8xf32>
      %116 = vector.multi_reduction <add>, %115, %cst_74 [1] : vector<8x32xf32> to vector<8xf32>
      %117 = vector.shape_cast %116 : vector<8xf32> to vector<8x1xf32>
      %cst_75 = arith.constant 3.200000e+01 : f32
      %118 = vector.broadcast %cst_75 : f32 to vector<8x1xf32>
      %119 = arith.divf %117, %118 : vector<8x1xf32>
      %120 = vector.broadcast %119 : vector<8x1xf32> to vector<8x32xf32>
      %121 = arith.subf %115, %120 : vector<8x32xf32>
      %122 = arith.mulf %121, %121 : vector<8x32xf32>
      %cst_76 = arith.constant dense<0.000000e+00> : vector<8xf32>
      %123 = vector.multi_reduction <add>, %122, %cst_76 [1] : vector<8x32xf32> to vector<8xf32>
      %124 = vector.shape_cast %123 : vector<8xf32> to vector<8x1xf32>
      %cst_77 = arith.constant 3.200000e+01 : f32
      %125 = vector.broadcast %cst_77 : f32 to vector<8x1xf32>
      %126 = arith.divf %124, %125 : vector<8x1xf32>
      %cst_78 = arith.constant 9.99999974E-6 : f32
      %127 = vector.broadcast %cst_78 : f32 to vector<8x1xf32>
      %128 = arith.addf %126, %127 : vector<8x1xf32>
      %129 = math.rsqrt %128 : vector<8x1xf32>
      %130 = vector.broadcast %129 : vector<8x1xf32> to vector<8x32xf32>
      %131 = arith.mulf %121, %130 : vector<8x32xf32>
      %c0_79 = arith.constant 0 : index
      %c0_80 = arith.constant 0 : index
      %132 = vector.load %arg13[%c0_79, %c0_80] : memref<1x32xf32, #tpu.memory_space<vmem>>, vector<1x32xf32>
      %133 = vector.broadcast %132 : vector<1x32xf32> to vector<8x32xf32>
      %134 = arith.mulf %131, %133 : vector<8x32xf32>
      %c0_81 = arith.constant 0 : index
      %c0_82 = arith.constant 0 : index
      %135 = vector.load %arg14[%c0_81, %c0_82] : memref<1x32xf32, #tpu.memory_space<vmem>>, vector<1x32xf32>
      %136 = vector.broadcast %135 : vector<1x32xf32> to vector<8x32xf32>
      %137 = arith.addf %134, %136 : vector<8x32xf32>
      %138 = arith.truncf %137 : vector<8x32xf32> to vector<8x32xbf16>
      %c0_83 = arith.constant 0 : index
      %c0_84 = arith.constant 0 : index
      %c0_85 = arith.constant 0 : index
      %139 = vector.load %arg15[%c0_83, %c0_84, %c0_85] : memref<1x8x32xbf16, #tpu.memory_space<vmem>>, vector<1x8x32xbf16>
      %140 = vector.shape_cast %139 : vector<1x8x32xbf16> to vector<8x32xbf16>
      %141 = vector.shape_cast %138 : vector<8x32xbf16> to vector<1x8x32xbf16>
      tpu.vector_store %arg15[%c0_83, %c0_84, %c0_85], %141 {strides = array<i32>} : memref<1x8x32xbf16, #tpu.memory_space<vmem>>, vector<1x8x32xbf16>,
    } else {
    }
    return
  }
  func.func @transform_0(%arg0: i32, %arg1: i32, %arg2: i32) -> (i32, i32, i32) {
    %c0_i32 = arith.constant 0 : i32
    %c0_i32_0 = arith.constant 0 : i32
    return %arg0, %arg1, %c0_i32 : i32, i32, i32
  }
  func.func @transform_1(%arg0: i32, %arg1: i32, %arg2: i32) -> (i32, i32, i32) {
    %c0_i32 = arith.constant 0 : i32
    %c0_i32_0 = arith.constant 0 : i32
    return %arg0, %arg2, %c0_i32 : i32, i32, i32
  }
  func.func @transform_2(%arg0: i32, %arg1: i32, %arg2: i32) -> (i32, i32, i32) {
    %c0_i32 = arith.constant 0 : i32
    %c0_i32_0 = arith.constant 0 : i32
    return %arg0, %arg2, %c0_i32 : i32, i32, i32
  }
  func.func @transform_3(%arg0: i32, %arg1: i32, %arg2: i32) -> (i32, i32, i32) {
    %c0_i32 = arith.constant 0 : i32
    %c0_i32_0 = arith.constant 0 : i32
    return %arg0, %arg1, %c0_i32 : i32, i32, i32
  }
  func.func @transform_4(%arg0: i32, %arg1: i32, %arg2: i32) -> (i32, i32) {
    %c0_i32 = arith.constant 0 : i32
    %c0_i32_0 = arith.constant 0 : i32
    %c0_i32_1 = arith.constant 0 : i32
    return %c0_i32, %c0_i32_0 : i32, i32
  }
  func.func @transform_5(%arg0: i32, %arg1: i32, %arg2: i32) -> (i32, i32) {
    %c0_i32 = arith.constant 0 : i32
    %c0_i32_0 = arith.constant 0 : i32
    %c0_i32_1 = arith.constant 0 : i32
    return %c0_i32, %c0_i32_0 : i32, i32
  }
  func.func @transform_6(%arg0: i32, %arg1: i32, %arg2: i32) -> (i32, i32) {
    %c0_i32 = arith.constant 0 : i32
    %c0_i32_0 = arith.constant 0 : i32
    %c0_i32_1 = arith.constant 0 : i32
    return %c0_i32, %c0_i32_0 : i32, i32
  }
  func.func @transform_7(%arg0: i32, %arg1: i32, %arg2: i32) -> (i32, i32) {
    %c0_i32 = arith.constant 0 : i32
    %c0_i32_0 = arith.constant 0 : i32
    %c0_i32_1 = arith.constant 0 : i32
    return %c0_i32, %c0_i32_0 : i32, i32
  }
  func.func @transform_8(%arg0: i32, %arg1: i32, %arg2: i32) -> (i32, i32) {
    %c0_i32 = arith.constant 0 : i32
    %c0_i32_0 = arith.constant 0 : i32
    %c0_i32_1 = arith.constant 0 : i32
    return %c0_i32, %c0_i32_0 : i32, i32
  }
  func.func @transform_9(%arg0: i32, %arg1: i32, %arg2: i32) -> (i32, i32) {
    %c0_i32 = arith.constant 0 : i32
    %c0_i32_0 = arith.constant 0 : i32
    %c0_i32_1 = arith.constant 0 : i32
    return %c0_i32, %c0_i32_0 : i32, i32
  }
  func.func @transform_10(%arg0: i32, %arg1: i32, %arg2: i32) -> (i32, i32) {
    %c0_i32 = arith.constant 0 : i32
    %c0_i32_0 = arith.constant 0 : i32
    %c0_i32_1 = arith.constant 0 : i32
    return %c0_i32, %c0_i32_0 : i32, i32
  }
  func.func @transform_11(%arg0: i32, %arg1: i32, %arg2: i32) -> (i32, i32) {
    %c0_i32 = arith.constant 0 : i32
    %c0_i32_0 = arith.constant 0 : i32
    %c0_i32_1 = arith.constant 0 : i32
    return %c0_i32, %c0_i32_0 : i32, i32
  }
  func.func @transform_12(%arg0: i32, %arg1: i32, %arg2: i32) -> (i32, i32, i32) {
    %c0_i32 = arith.constant 0 : i32
    %c0_i32_0 = arith.constant 0 : i32
    return %arg0, %arg1, %c0_i32 : i32, i32, i32
  }
}

module attributes {stable_mosaic.version = 11 : i64} {
  func.func @_ln_ffn_res_kernel(%arg0: i32, %arg1: memref<16x32xbf16, #tpu.memory_space<vmem>>, %arg2: memref<1x32xf32, #tpu.memory_space<vmem>>, %arg3: memref<1x32xf32, #tpu.memory_space<vmem>>, %arg4: memref<32x64xbf16, #tpu.memory_space<vmem>>, %arg5: memref<1x64xf32, #tpu.memory_space<vmem>>, %arg6: memref<64x32xbf16, #tpu.memory_space<vmem>>, %arg7: memref<1x32xf32, #tpu.memory_space<vmem>>, %arg8: memref<16x32xf32, #tpu.memory_space<vmem>>) attributes {dimension_semantics = [#tpu.dimension_semantics<parallel>], iteration_bounds = array<i64: 1>, scalar_prefetch = 0 : i64, scratch_operands = 0 : i64, tpu.core_type = #tpu.core_type<tc>, window_params = [{transform_indices = @transform_0, window_bounds = array<i64: 16, 32>}, {pipeline_mode = #tpu.pipeline_mode<synchronous>, transform_indices = @transform_1, window_bounds = array<i64: 1, 32>}, {pipeline_mode = #tpu.pipeline_mode<synchronous>, transform_indices = @transform_2, window_bounds = array<i64: 1, 32>}, {pipeline_mode = #tpu.pipeline_mode<synchronous>, transform_indices = @transform_3, window_bounds = array<i64: 32, 64>}, {pipeline_mode = #tpu.pipeline_mode<synchronous>, transform_indices = @transform_4, window_bounds = array<i64: 1, 64>}, {pipeline_mode = #tpu.pipeline_mode<synchronous>, transform_indices = @transform_5, window_bounds = array<i64: 64, 32>}, {pipeline_mode = #tpu.pipeline_mode<synchronous>, transform_indices = @transform_6, window_bounds = array<i64: 1, 32>}, {transform_indices = @transform_7, window_bounds = array<i64: 16, 32>}]} {
    %c0 = arith.constant 0 : index
    %c0_0 = arith.constant 0 : index
    %0 = vector.load %arg1[%c0, %c0_0] : memref<16x32xbf16, #tpu.memory_space<vmem>>, vector<16x32xbf16>
    %1 = arith.extf %0 : vector<16x32xbf16> to vector<16x32xf32>
    %cst = arith.constant dense<0.000000e+00> : vector<16xf32>
    %2 = vector.multi_reduction <add>, %1, %cst [1] : vector<16x32xf32> to vector<16xf32>
    %3 = vector.shape_cast %2 : vector<16xf32> to vector<16x1xf32>
    %cst_1 = arith.constant 3.200000e+01 : f32
    %4 = vector.broadcast %cst_1 : f32 to vector<16x1xf32>
    %5 = arith.divf %3, %4 : vector<16x1xf32>
    %6 = vector.broadcast %5 : vector<16x1xf32> to vector<16x32xf32>
    %7 = arith.subf %1, %6 : vector<16x32xf32>
    %8 = arith.mulf %7, %7 : vector<16x32xf32>
    %cst_2 = arith.constant dense<0.000000e+00> : vector<16xf32>
    %9 = vector.multi_reduction <add>, %8, %cst_2 [1] : vector<16x32xf32> to vector<16xf32>
    %10 = vector.shape_cast %9 : vector<16xf32> to vector<16x1xf32>
    %cst_3 = arith.constant 3.200000e+01 : f32
    %11 = vector.broadcast %cst_3 : f32 to vector<16x1xf32>
    %12 = arith.divf %10, %11 : vector<16x1xf32>
    %cst_4 = arith.constant 9.99999974E-6 : f32
    %13 = vector.broadcast %cst_4 : f32 to vector<16x1xf32>
    %14 = arith.addf %12, %13 : vector<16x1xf32>
    %15 = math.rsqrt %14 : vector<16x1xf32>
    %16 = vector.broadcast %15 : vector<16x1xf32> to vector<16x32xf32>
    %17 = arith.mulf %7, %16 : vector<16x32xf32>
    %c0_5 = arith.constant 0 : index
    %c0_6 = arith.constant 0 : index
    %18 = vector.load %arg2[%c0_5, %c0_6] : memref<1x32xf32, #tpu.memory_space<vmem>>, vector<1x32xf32>
    %19 = vector.broadcast %18 : vector<1x32xf32> to vector<16x32xf32>
    %20 = arith.mulf %17, %19 : vector<16x32xf32>
    %c0_7 = arith.constant 0 : index
    %c0_8 = arith.constant 0 : index
    %21 = vector.load %arg3[%c0_7, %c0_8] : memref<1x32xf32, #tpu.memory_space<vmem>>, vector<1x32xf32>
    %22 = vector.broadcast %21 : vector<1x32xf32> to vector<16x32xf32>
    %23 = arith.addf %20, %22 : vector<16x32xf32>
    %24 = arith.truncf %23 : vector<16x32xf32> to vector<16x32xbf16>
    %c0_9 = arith.constant 0 : index
    %c0_10 = arith.constant 0 : index
    %25 = vector.load %arg4[%c0_9, %c0_10] : memref<32x64xbf16, #tpu.memory_space<vmem>>, vector<32x64xbf16>
    %cst_11 = arith.constant dense<0.000000e+00> : vector<16x64xf32>
    %26 = tpu.matmul %24, %25, %cst_11 {dimension_numbers = #tpu.dot_dimension_numbers<[1], [0], [0], [1], [0, 0, 1, 1], [], []>} : vector<16x32xbf16>, vector<32x64xbf16>, vector<16x64xf32> -> vector<16x64xf32>
    %c0_12 = arith.constant 0 : index
    %c0_13 = arith.constant 0 : index
    %27 = vector.load %arg5[%c0_12, %c0_13] : memref<1x64xf32, #tpu.memory_space<vmem>>, vector<1x64xf32>
    %28 = vector.broadcast %27 : vector<1x64xf32> to vector<16x64xf32>
    %29 = arith.addf %26, %28 : vector<16x64xf32>
    %cst_14 = arith.constant 0.000000e+00 : f32
    %30 = vector.broadcast %cst_14 : f32 to vector<16x64xf32>
    %31 = arith.maximumf %29, %30 : vector<16x64xf32>
    %32 = arith.truncf %31 : vector<16x64xf32> to vector<16x64xbf16>
    %c0_15 = arith.constant 0 : index
    %c0_16 = arith.constant 0 : index
    %33 = vector.load %arg6[%c0_15, %c0_16] : memref<64x32xbf16, #tpu.memory_space<vmem>>, vector<64x32xbf16>
    %cst_17 = arith.constant dense<0.000000e+00> : vector<16x32xf32>
    %34 = tpu.matmul %32, %33, %cst_17 {dimension_numbers = #tpu.dot_dimension_numbers<[1], [0], [0], [1], [0, 0, 1, 1], [], []>} : vector<16x64xbf16>, vector<64x32xbf16>, vector<16x32xf32> -> vector<16x32xf32>
    %c0_18 = arith.constant 0 : index
    %c0_19 = arith.constant 0 : index
    %35 = vector.load %arg7[%c0_18, %c0_19] : memref<1x32xf32, #tpu.memory_space<vmem>>, vector<1x32xf32>
    %36 = vector.broadcast %35 : vector<1x32xf32> to vector<16x32xf32>
    %37 = arith.addf %34, %36 : vector<16x32xf32>
    %38 = arith.addf %1, %37 : vector<16x32xf32>
    %c0_20 = arith.constant 0 : index
    %c0_21 = arith.constant 0 : index
    %39 = vector.load %arg8[%c0_20, %c0_21] : memref<16x32xf32, #tpu.memory_space<vmem>>, vector<16x32xf32>
    tpu.vector_store %arg8[%c0_20, %c0_21], %38 {strides = array<i32>} : memref<16x32xf32, #tpu.memory_space<vmem>>, vector<16x32xf32>,
    return
  }
  func.func @transform_0(%arg0: i32) -> (i32, i32) {
    %c0_i32 = arith.constant 0 : i32
    %c0_i32_0 = arith.constant 0 : i32
    return %arg0, %c0_i32 : i32, i32
  }
  func.func @transform_1(%arg0: i32) -> (i32, i32) {
    %c0_i32 = arith.constant 0 : i32
    %c0_i32_0 = arith.constant 0 : i32
    %c0_i32_1 = arith.constant 0 : i32
    return %c0_i32, %c0_i32_0 : i32, i32
  }
  func.func @transform_2(%arg0: i32) -> (i32, i32) {
    %c0_i32 = arith.constant 0 : i32
    %c0_i32_0 = arith.constant 0 : i32
    %c0_i32_1 = arith.constant 0 : i32
    return %c0_i32, %c0_i32_0 : i32, i32
  }
  func.func @transform_3(%arg0: i32) -> (i32, i32) {
    %c0_i32 = arith.constant 0 : i32
    %c0_i32_0 = arith.constant 0 : i32
    %c0_i32_1 = arith.constant 0 : i32
    return %c0_i32, %c0_i32_0 : i32, i32
  }
  func.func @transform_4(%arg0: i32) -> (i32, i32) {
    %c0_i32 = arith.constant 0 : i32
    %c0_i32_0 = arith.constant 0 : i32
    %c0_i32_1 = arith.constant 0 : i32
    return %c0_i32, %c0_i32_0 : i32, i32
  }
  func.func @transform_5(%arg0: i32) -> (i32, i32) {
    %c0_i32 = arith.constant 0 : i32
    %c0_i32_0 = arith.constant 0 : i32
    %c0_i32_1 = arith.constant 0 : i32
    return %c0_i32, %c0_i32_0 : i32, i32
  }
  func.func @transform_6(%arg0: i32) -> (i32, i32) {
    %c0_i32 = arith.constant 0 : i32
    %c0_i32_0 = arith.constant 0 : i32
    %c0_i32_1 = arith.constant 0 : i32
    return %c0_i32, %c0_i32_0 : i32, i32
  }
  func.func @transform_7(%arg0: i32) -> (i32, i32) {
    %c0_i32 = arith.constant 0 : i32
    %c0_i32_0 = arith.constant 0 : i32
    return %arg0, %c0_i32 : i32, i32
  }
}

</mosaic_0001>

<bundles_post_ra>
// kernel: _lambda_.5
= control target key start
LH: loop header
LB: loop body
LE: loop exit
PB: predicated region body
PF: predicated region fallthrough
CT: control target
= control target key end

     0   :  { %v131_v0 = vmov 0.0   ;;  %vm132_vm0 = vmmov 0   ;;  %vm48_vm1 = vcmask 261120   ;;  %vm101_vm2 = vcmask 257024   ;;  %s185_s2 = inlined_call_operand.vmem [shape: bf16[32,32], index: 2, kind: input, shape index: {}]   ;;  %s186_s0 = inlined_call_operand.vmem [shape: f32[16,32], index: 0, kind: input, shape index: {}]   ;;  %s187_s1 = inlined_call_operand.vmem [shape: f32[16,32], index: 1, kind: input, shape index: {}]   ;;  %s188_s3 = inlined_call_operand.vmem [shape: f32[1,32], index: 3, kind: input, shape index: {}]   ;;  %s189_s4 = inlined_call_operand.vmem [shape: bf16[16,32], index: 4, kind: output, shape index: {}]  }
   0x1   :  { %119 = vmatprep.subr.bf16.mxu0 %v131_v0  ;;  %v129_v1 = vld [vmem:[%s185_s2] sm:$0xff]   ;;  %123 = vmatprep.mubr.msk.bf16.mxu0 %vm132_vm0, %v131_v0  ;;  %v130_v2 = vld [vmem:[%s185_s2 + $0x8] sm:$0xff]  }
   0x2   :  { %120 = vmatpush3.bf16.msra.mxu0 %v129_v1  ;;  %v18_v3 = vld [vmem:[%s186_s0] sm:$0xff]  ;;  %v19_v4 = vld [vmem:[%s186_s0 + $0x8] sm:$0xff] }
   0x3   :  { %v20_v5 = vld [vmem:[%s187_s1] sm:$0xff]  ;;  %121 = vmatprep.subr.bf16.mxu0 %v131_v0  ;;  %v21_v6 = vld [vmem:[%s187_s1 + $0x8] sm:$0xff] }
   0x4   :  { %v22_v7 = vadd.f32 %v20_v5, %v18_v3  ;;  %v23_v8 = vadd.f32 %v21_v6, %v19_v4  ;;  %v108_v10 = vld [vmem:[%s188_s3] ss:$0 sm:$0xff] }
   0x6   :  { %122 = vmatpush3.bf16.msra.mxu0 %v130_v2  ;;  %v24_v9 = vpack.c.bf16 %v23_v8, %v22_v7 }
   0x9   :  { %124 = vmatmul.mubr.msk.bf16.vlgmr.msra.gmra.mrb[0].mxu0 %vm48_vm1, %v24_v9 }
  0xdc   :  { %v86_v11 = vpop.f32.mrb[0].mxu0 }
  0xdd   :  { %v87_v12 = vadd.f32 %v108_v10, %v86_v11  ;;  %v125_v13 = vpop.f32.mrb[1].mxu0 }
  0xde   :  { %v89_v14 = vpop.f32.mrb[2].mxu0 }
  0xdf   :  { %v114_v15 = vpack.c.bf16 %v87_v12, %v87_v12  ;;  %v90_v16 = vadd.f32 %v108_v10, %v89_v14  ;;  %v126_v17 = vpop.f32.mrb[3].mxu0 }
  0xe1   :  { %102 = vst.msk [vmem:[%s189_s4] sm:$0xf] %vm101_vm2, %v114_v15  ;;  %v115_v18 = vpack.c.bf16 %v90_v16, %v90_v16 }
  0xe3   :  { %103 = vst.msk [vmem:[%s189_s4 + $0x4] sm:$0xf] %vm101_vm2, %v115_v18 }

// kernel: _lambda_.7
= control target key start
LH: loop header
LB: loop body
LE: loop exit
PB: predicated region body
PF: predicated region fallthrough
CT: control target
= control target key end

     0   :  { %v130_v0 = vmov 0.0   ;;  %vm131_vm0 = vmmov 0   ;;  %vm45_vm1 = vcmask 261120   ;;  %vm98_vm2 = vcmask 257024   ;;  %s170_s1 = inlined_call_operand.vmem [shape: bf16[32,32], index: 1, kind: input, shape index: {}]   ;;  %s171_s0 = inlined_call_operand.vmem [shape: bf16[16,32], index: 0, kind: input, shape index: {}]   ;;  %s172_s2 = inlined_call_operand.vmem [shape: f32[1,32], index: 2, kind: input, shape index: {}]   ;;  %s173_s3 = inlined_call_operand.vmem [shape: bf16[16,32], index: 3, kind: output, shape index: {}]  }
   0x1   :  { %117 = vmatprep.subr.bf16.mxu0 %v130_v0  ;;  %v127_v1 = vld [vmem:[%s170_s1] sm:$0xff]   ;;  %121 = vmatprep.mubr.msk.bf16.mxu0 %vm131_vm0, %v130_v0  ;;  %v128_v2 = vld [vmem:[%s170_s1 + $0x8] sm:$0xff]  }
   0x2   :  { %118 = vmatpush3.bf16.msra.mxu0 %v127_v1  ;;  %v129_v3 = vld [vmem:[%s171_s0] sm:$0xff]  }
   0x3   :  { %119 = vmatprep.subr.bf16.mxu0 %v130_v0  ;;  %v105_v4 = vld [vmem:[%s172_s2] ss:$0 sm:$0xff] }
   0x6   :  { %120 = vmatpush3.bf16.msra.mxu0 %v128_v2 }
   0x9   :  { %122 = vmatmul.mubr.msk.bf16.vlgmr.msra.gmra.mrb[0].mxu0 %vm45_vm1, %v129_v3 }
  0xdc   :  { %v83_v5 = vpop.f32.mrb[0].mxu0 }
  0xdd   :  { %v84_v6 = vadd.f32 %v105_v4, %v83_v5  ;;  %v123_v7 = vpop.f32.mrb[1].mxu0 }
  0xde   :  { %v86_v8 = vpop.f32.mrb[2].mxu0 }
  0xdf   :  { %v112_v9 = vpack.c.bf16 %v84_v6, %v84_v6  ;;  %v87_v10 = vadd.f32 %v105_v4, %v86_v8  ;;  %v124_v11 = vpop.f32.mrb[3].mxu0 }
  0xe1   :  { %99 = vst.msk [vmem:[%s173_s3] sm:$0xf] %vm98_vm2, %v112_v9  ;;  %v113_v12 = vpack.c.bf16 %v87_v10, %v87_v10 }
  0xe3   :  { %100 = vst.msk [vmem:[%s173_s3 + $0x4] sm:$0xf] %vm98_vm2, %v113_v12 }

// kernel: _lambda_.6
= control target key start
LH: loop header
LB: loop body
LE: loop exit
PB: predicated region body
PF: predicated region fallthrough
CT: control target
= control target key end

     0   :  { %s1446_s21 = smov 0   ;;  %s1448_s22 = smov 0   ;;  %s1592_s0 = inlined_call_operand.vmem [shape: bf16[2,8,32], index: 0, kind: input, shape index: {}]   ;;  %s1593_s1 = inlined_call_operand.vmem [shape: f32[2,8,32], index: 1, kind: input, shape index: {}, may-alias: {1,3}]   ;;  %s1594_s2 = inlined_call_operand.vmem [shape: f32[2,8,32], index: 2, kind: input, shape index: {}]   ;;  %s1595_s3 = inlined_call_operand.vmem [shape: f32[2,8,32], index: 3, kind: input, shape index: {}, may-alias: {1,3}]   ;;  %s1596_s4 = inlined_call_operand.vmem [shape: bf16[32,32], index: 4, kind: input, shape index: {}]   ;;  %s1597_s5 = inlined_call_operand.vmem [shape: f32[1,32], index: 5, kind: input, shape index: {}]   ;;  %s1598_s6 = inlined_call_operand.vmem [shape: bf16[32,32], index: 6, kind: input, shape index: {}]   ;;  %s1599_s7 = inlined_call_operand.vmem [shape: f32[1,32], index: 7, kind: input, shape index: {}]   ;;  %s1600_s8 = inlined_call_operand.vmem [shape: bf16[32,32], index: 8, kind: input, shape index: {}]   ;;  %s1601_s9 = inlined_call_operand.vmem [shape: f32[1,32], index: 9, kind: input, shape index: {}]   ;;  %s1602_s10 = inlined_call_operand.vmem [shape: f32[1,32], index: 10, kind: input, shape index: {}]   ;;  %s1603_s11 = inlined_call_operand.vmem [shape: f32[1,32], index: 11, kind: input, shape index: {}]   ;;  %s1604_s12 = inlined_call_operand.vmem [shape: bf16[2,8,32], index: 12, kind: output, shape index: {}]  }
   0x1   :  { %s1450_s23 = smov 0  }
   0x2 LB: > { %s41_s24 = sadd.s32 1, %s1369_s22  ;;  %p1206_p0 = scmp.ge.s32.totalorder %s1373_s23, 1  ;;  %s1373_s23 = sphi %s1450_s23, %s22_s23   ;;  %s1369_s22 = sphi %s1448_s22, %s1606_s22   ;;  %s1365_s21 = sphi %s1446_s21, %s1605_s21  }
   0x3   : > { %p43_p1 = scmp.ge.s32.totalorder %s41_s24, 2  ;;  %p429_p2 = scmp.lt.s32.totalorder %s1373_s23, 3 }
   0x5   : > { %s1608_s24 = smov (%p43_p1, %s41_s24), 0  ;;  %p430_p3 = pnand %p1206_p0, %p429_p2 }
   0x6   : > { %v1330_v0 = vld [vmem:[%s1596_s4] sm:$0xff] (!%p430_p3)   ;;  %v1375_v1 = vmov (!%p430_p3), 0.0   ;;  %v1331_v2 = vld [vmem:[%s1596_s4 + $0x8] sm:$0xff] (!%p430_p3)   ;;  %vm1376_vm0 = vmmov (!%p430_p3), 0   ;;  %p496_p4 = scmp.lt.s32.totalorder (!%p430_p3), %s1365_s21, 1  ;;  %vm541_vm1 = vcmask (!%p430_p3), 261120  }
   0x7   : > { %433 = sbr.rel (%p430_p3) target bundleno = 1745 (0x6d1), region = 68  ;;  %1250 = vmatprep.subr.bf16.mxu0 (!%p430_p3), %v1375_v1  ;;  %1258 = vmatprep.subr.bf16.mxu1 (!%p430_p3), %v1375_v1  ;;  %542 = vst.msk [vmem:[#allocation4] sm:$0xff] (!%p430_p3), %vm541_vm1, %v1375_v1  ;;  %v1212_v7 = vld [vmem:[%s1597_s5] ss:$0 sm:$0xff] (!%p430_p3)  ;;  %vm684_vm2 = vcmask (!%p430_p3), 130048   ;;  %s1377_s28 = smov (!%p430_p3), 112  }
   0x8   : > { %1251 = vmatpush3.bf16.msra.mxu0 (!%p430_p3), %v1330_v0  ;;  %1254 = vmatprep.mubr.msk.bf16.mxu0 (!%p430_p3), %vm1376_vm0, %v1375_v1  ;;  %v1333_v17 = vld [vmem:[%s1598_s6] sm:$0xff] (!%p430_p3)   ;;  %v1334_v18 = vld [vmem:[%s1598_s6 + $0x8] sm:$0xff] (!%p430_p3)   ;;  %vm536_vm3 = vcmask (!%p430_p3), 7168   ;;  %v1378_v23 = vmov (!%p430_p3), -inf   ;;  %vm732_vm4 = vcmask (!%p430_p3), 64512   ;;  %v1379_v29 = vmov (!%p430_p3), 0  }
   0x9   : > { %1252 = vmatprep.subr.bf16.mxu0 (!%p430_p3), %v1375_v1  ;;  %1262 = vmatprep.mubr.msk.bf16.mxu1 (!%p430_p3), %vm1376_vm0, %v1375_v1  ;;  %537 = vst.msk [vmem:[#allocation2] sm:$0xff] (!%p430_p3), %vm536_vm3, %v1378_v23  ;;  %538 = vst.msk [vmem:[#allocation2 + $0x8] sm:$0xff] (!%p430_p3), %vm536_vm3, %v1378_v23  ;;  %v1216_v30 = vld [vmem:[%s1599_s7] ss:$0 sm:$0xff] (!%p430_p3)  ;;  %vm760_vm5 = vcmask (!%p430_p3), 1043456   ;;  %s1380_s25 = smov (!%p430_p3), 16  }
   0xa   : > { %1259 = vmatpush3.bf16.msra.mxu1 (!%p430_p3), %v1333_v17  ;;  %539 = vst.msk [vmem:[#allocation3] sm:$0xff] (!%p430_p3), %vm536_vm3, %v1375_v1  ;;  %540 = vst.msk [vmem:[#allocation3 + $0x8] sm:$0xff] (!%p430_p3), %vm536_vm3, %v1375_v1  ;;  %1328 = vset.pattern.permute.xlu0 (!%p430_p3), %v1379_v29  ;;  %vm955_vm6 = vcmask (!%p430_p3), 261248   ;;  %vm1078_vm7 = vcmask (!%p430_p3), 257024  }
   0xb   : > { %1260 = vmatprep.subr.bf16.mxu1 (!%p430_p3), %v1375_v1  ;;  %1329 = vset.pattern.permute.xlu1 (!%p430_p3), %v1379_v29 }
   0xc   : > { %1253 = vmatpush3.bf16.msra.mxu0 (!%p430_p3), %v1331_v2 }
   0xd   : > { %1266 = vmatprep.subr.bf16.mxu0 (!%p430_p3), %v1375_v1 }
   0xe   : > { %s1610_s21 = smov (!%p496_p4, %s1365_s21), 1  ;;  %1261 = vmatpush3.bf16.msra.mxu1 %v1334_v18 }
   0xf   : > { %s1482_s29 = sshll.u32 %s1610_s21, 3  ;;  %s1207_s18 = sshll.u32 %s1610_s21, 2  ;;  %1272 = vmatprep.subr.bf16.mxu1 %v1375_v1 }
  0x10   : > { %s509_s14 = scalar_lea.vmem %s1593_s1, %s1482_s29  ;;  %s516_s17 = scalar_lea.vmem %s1594_s2, %s1482_s29  ;;  %v731_v43 = vld [vmem:[#allocation2] sm:$0xff]  ;;  %v869_v47 = vld [vmem:[#allocation2 + $0x8] sm:$0xff] }
  0x11   : > { %v544_v3 = vld [vmem:[%s509_s14] sm:$0xff]  ;;  %s502_s27 = scalar_lea.vmem %s1592_s0, %s1207_s18  ;;  %v886_v18 = vld [vmem:[#allocation3 + $0x8] sm:$0xff]  ;;  %s523_s13 = scalar_lea.vmem %s1595_s3, %s1482_s29 }
  0x12   : > { %v545_v4 = vld [vmem:[%s516_s17] sm:$0xff]  ;;  %v616_v19 = vpack.c.bf16 %v544_v3, %v544_v3  ;;  %s530_s26 = scalar_lea.vmem %s1604_s12, %s1207_s18 }
  0x13   : > { %v546_v5 = vadd.f32 %v545_v4, %v544_v3  ;;  %v543_v12 = vld [vmem:[%s502_s27] sm:$0xf] }
  0x14   : > { %v1222_v16 = vcombine.low %v543_v12, %v543_v12  ;;  %1263 = vmatmul.mubr.msk.bf16.vlgmr.msra.gmra.mrb[0].mxu1 %vm541_vm1, %v616_v19 }
  0x15   : > { %v547_v6 = vpack.c.bf16 %v546_v5, %v546_v5  ;;  %1274 = vmatprep.mubr.msk.bf16.mxu1 %vm1376_vm0, %v1375_v1 }
  0x17   : > { %1255 = vmatmul.mubr.msk.bf16.vlgmr.msra.gmra.mrb[0].mxu0 %vm541_vm1, %v547_v6  ;;  %v748_v6 = vld [vmem:[#allocation3] sm:$0xff] }
  0x18   : > { %1268 = vmatprep.mubr.msk.bf16.mxu0 %vm1376_vm0, %v1375_v1 }
  0xe7   : > { %v677_v31 = vpop.f32.mrb[0].mxu1 }
  0xe8   : > { %v678_v32 = vadd.f32 %v1216_v30, %v677_v31  ;;  %v1264_v33 = vpop.f32.mrb[1].mxu1  ;;  %v1336_v31 = vld [vmem:[%s1600_s8 + $0x8] sm:$0xff]  }
  0xe9   : > { %v680_v34 = vpop.f32.mrb[2].mxu1 }
  0xea   : > { %v609_v8 = vpop.f32.mrb[0].mxu0  ;;  %v683_v35 = vpack.c.bf16 %v678_v32, %v678_v32  ;;  %v1265_v36 = vpop.f32.mrb[3].mxu1 }
  0xeb   : > { %v610_v9 = vadd.f32 %v1212_v7, %v609_v8  ;;  %v1256_v10 = vpop.f32.mrb[1].mxu0 }
  0xec   : > { %v612_v11 = vpop.f32.mrb[2].mxu0  ;;  %v762_v37 = vsel %vm760_vm5, %v683_v35, 0  ;;  %v804_v10 = vld [vmem:[#allocation4] sm:$0xff] }
  0xed   : > { %v615_v13 = vpack.c.bf16 %v610_v9, %v610_v9  ;;  %v1257_v14 = vpop.f32.mrb[3].mxu0  ;;  %1273 = vmatpush3.bf16.msra.mxu1 %v762_v37 }
  0xee   : > { %1284 = vmatprep.subr.bf16.mxu1 %v1375_v1 }
  0xef   : > { %v689_v15 = vsel %vm684_vm2, %v615_v13, 0  ;;  %820 = vrot.lane.b32.xlu0 %v615_v13, %s1377_s28 }
  0xf0   : > { %1267 = vmatpush3.bf16.xpose.msra.mxu0 %v689_v15 }
  0xf1   : > { %1278 = vmatprep.subr.bf16.mxu0 %v1375_v1 }
  0xf3   : > { %817 = vrot.lane.b32.xlu0 %v1222_v16, %s1377_s28 }
  0xf7   : > { %1269 = vmatmul.mubr.msk.bf16.vlgmr.msra.gmra.mrb[4].mxu0 %vm684_vm2, %v543_v12 }
  0xf8   : > { %1280 = vmatprep.mubr.msk.bf16.mxu0 %vm1376_vm0, %v1375_v1 }
 0x161   : > { %v821_v20 = vpop.permute.xlu0 %820 }
 0x162   : > { %v826_v21 = vsel %vm684_vm2, %v821_v20, 0 }
 0x163   : > { %1279 = vmatpush3.bf16.xpose.msra.mxu0 %v826_v21 }
 0x164   : > { %1290 = vmatprep.subr.bf16.mxu0 %v1375_v1 }
 0x165   : > { %v818_v22 = vpop.permute.xlu0 %817 }
 0x16a   : > { %1281 = vmatmul.mubr.msk.bf16.vlgmr.msra.gmra.mrb[8].mxu0 %vm684_vm2, %v818_v22 }
 0x16b   : > { %1294 = vmatprep.mubr.msk.bf16.mxu0 %vm1376_vm0, %v1375_v1 }
 0x1ca   : > { %v725_v24 = vpop.f32.mrb[4].mxu0 }
 0x1cb   : > { %v733_v25 = vsel %vm732_vm4, %v725_v24, -inf  ;;  %v1270_v26 = vpop.f32.mrb[5].mxu0 }
 0x1cc   : > { %734 = vmax.xlane.f32.xlu1 %v733_v25  ;;  %v728_v27 = vpop.f32.mrb[6].mxu0 }
 0x1cd   : > { %v1271_v28 = vpop.f32.mrb[7].mxu0 }
 0x23d   : > { %v862_v38 = vpop.f32.mrb[8].mxu0 }
 0x23e   : > { %v1282_v39 = vpop.f32.mrb[9].mxu0  ;;  %v870_v40 = vsel %vm732_vm4, %v862_v38, -inf }
 0x23f   : > { %871 = vmax.xlane.f32.xlu1 %v870_v40  ;;  %v865_v41 = vpop.f32.mrb[10].mxu0 }
 0x240   : > { %v1283_v42 = vpop.f32.mrb[11].mxu0 }
 0x241   : > { %v1225_v42 = vld [vmem:[%s1601_s9] ss:$0 sm:$0xff] }
 0x259   : > { %v735_v44 = vpop.xlane.xlu1 %734 }
 0x25a   : > { %v736_v45 = vmax.f32 %v731_v43, %v735_v44  ;;  %v1045_v44 = vld [vmem:[%s523_s13] sm:$0xff] }
 0x25c   : > { %v737_v46 = vsub.f32 %v731_v43, %v736_v45  ;;  %813 = vst.msk [vmem:[#allocation2] sm:$0xff] %vm536_vm3, %v736_v45  ;;  %742 = vperm.xlu0 %1328, %v736_v45  }
 0x25e   : > { %v738_v59 = vmul.f32 1.442695, %v737_v46 }
 0x260   : > { %895 = vrot.lane.b32.xlu0 %v683_v35, %s1377_s28 }
 0x2cc   : > { %v872_v48 = vpop.xlane.xlu1 %871 }
 0x2cd   : > { %v873_v49 = vmax.f32 %v869_v47, %v872_v48 }
 0x2cf   : > { %v874_v50 = vsub.f32 %v869_v47, %v873_v49  ;;  %957 = vst.msk [vmem:[#allocation2 + $0x8] sm:$0xff] %vm536_vm3, %v873_v49  ;;  %879 = vperm.xlu1 %1329, %v873_v49  }
 0x2d1   : > { %v875_v4 = vmul.f32 1.442695, %v874_v50 }
 0x2db   : > { %v743_v51 = vpop.permute.xlu0 %742 }
 0x2dc   : > { %v745_v52 = vsub.f32 %v725_v24, %v743_v51  ;;  %v1335_v24 = vld [vmem:[%s1600_s8] sm:$0xff]  }
 0x2dd   : > { %1291 = vmatpush3.bf16.msra.mxu0 %v1335_v24 }
 0x2de   : > { %v746_v53 = vmul.f32 1.442695, %v745_v52  ;;  %1292 = vmatprep.subr.bf16.mxu0 %v1375_v1 }
 0x2df   : > { %v896_v54 = vpop.permute.xlu0 %895 }
 0x2e0   : > { %1337 = vpow2.f32 %v746_v53  ;;  %v901_v58 = vsel %vm760_vm5, %v896_v54, 0 }
 0x2e1   : > { %1339 = vpow2.f32 %v738_v59  ;;  %1293 = vmatpush3.bf16.msra.mxu0 %v1336_v31 }
 0x2ea   : > { %v1338_v55 = vpop.eup %1337 }
 0x2eb   : > { %v750_v56 = vsel %vm732_vm4, %v1338_v55, 0.0  ;;  %v756_v57 = vpack.c.bf16 %v1338_v55, %v1338_v55  ;;  %v1340_v60 = vpop.eup %1339 }
 0x2ec   : > { %751 = vadd.xlane.f32.xlu0 %v750_v56  ;;  %v749_v7 = vmul.f32 %v1340_v60, %v748_v6 }
 0x2ed   : > { %1275 = vmatmul.mubr.msk.bf16.vlgmr.msra.gmra.mrb[4].mxu1 %vm732_vm4, %v756_v57 }
 0x2ee   : > { %1285 = vmatpush3.bf16.msra.mxu1 %v901_v58  ;;  %1286 = vmatprep.mubr.msk.bf16.mxu1 %vm1376_vm0, %v1375_v1 }
 0x302   : > { %807 = vperm.xlu0 %1328, %v1340_v60   ;;  %v1229_v60 = vld [vmem:[%s1602_s10] ss:$0 sm:$0xff] }
 0x34e   : > { %v880_v61 = vpop.permute.xlu1 %879 }
 0x34f   : > { %v882_v62 = vsub.f32 %v862_v38, %v880_v61 }
 0x351   : > { %v883_v63 = vmul.f32 1.442695, %v882_v62  ;;  %v1230_v62 = vld [vmem:[%s1603_s11] ss:$0 sm:$0xff] }
 0x353   : > { %1341 = vpow2.f32 %v883_v63 }
 0x354   : > { %1343 = vpow2.f32 %v875_v4 }
 0x35d   : > { %v1342_v0 = vpop.eup %1341 }
 0x35e   : > { %v888_v2 = vsel %vm732_vm4, %v1342_v0, 0.0  ;;  %v893_v3 = vpack.c.bf16 %v1342_v0, %v1342_v0  ;;  %v1344_v5 = vpop.eup %1343 }
 0x35f   : > { %889 = vadd.xlane.f32.xlu1 %v888_v2  ;;  %v887_v19 = vmul.f32 %v1344_v5, %v886_v18 }
 0x360   : > { %1287 = vmatmul.mubr.msk.bf16.vlgmr.msra.gmra.mrb[8].mxu1 %vm732_vm4, %v893_v3 }
 0x370   : > { %946 = vperm.xlu1 %1329, %v1344_v5  }
 0x379   : > { %v752_v8 = vpop.xlane.xlu0 %751 }
 0x37a   : > { %v753_v9 = vadd.f32 %v752_v8, %v749_v7 }
 0x37c   : > { %755 = vst.msk [vmem:[#allocation3] sm:$0xff] %vm536_vm3, %v753_v9 }
 0x381   : > { %v808_v11 = vpop.permute.xlu0 %807 }
 0x382   : > { %v810_v12 = vmul.f32 %v808_v11, %v804_v10 }
 0x383   : > { %v961_v25 = vld [vmem:[#allocation3] sm:$0xff] }
 0x3c0   : > { %v798_v13 = vpop.f32.mrb[4].mxu1 }
 0x3c1   : > { %v811_v14 = vadd.f32 %v810_v12, %v798_v13  ;;  %v1276_v15 = vpop.f32.mrb[5].mxu1 }
 0x3c2   : > { %v801_v16 = vpop.f32.mrb[6].mxu1 }
 0x3c3   : > { %812 = vst.msk [vmem:[#allocation4] sm:$0xff] %vm684_vm2, %v811_v14  ;;  %v1277_v17 = vpop.f32.mrb[7].mxu1 }
 0x3ca   : > { %v943_v33 = vld [vmem:[#allocation4] sm:$0xff] }
 0x3ec   : > { %v890_v20 = vpop.xlane.xlu1 %889 }
 0x3ed   : > { %v891_v21 = vadd.f32 %v890_v20, %v887_v19 }
 0x3ef   : > { %892 = vst.msk [vmem:[#allocation3 + $0x8] sm:$0xff] %vm536_vm3, %v891_v21 }
 0x3f0   : > { %v947_v32 = vpop.permute.xlu1 %946 }
 0x3f1   : > { %v949_v34 = vmul.f32 %v947_v32, %v943_v33 }
 0x3f6   : > { %v968_v22 = vld [vmem:[#allocation3 + $0x8] sm:$0xff] }
 0x3f7   : > { %1345 = vrcp.f32 %v968_v22 }
 0x3f8   : > { %1347 = vrcp.f32 %v961_v25 }
 0x401   : > { %v1346_v23 = vpop.eup %1345 }
 0x402   : > { %972 = vperm.xlu1 %1329, %v1346_v23   ;;  %v1348_v30 = vpop.eup %1347 }
 0x433   : > { %v937_v26 = vpop.f32.mrb[8].mxu1 }
 0x434   : > { %951 = vrot.lane.b32.xlu0 %v937_v26, %s1380_s25  ;;  %v1288_v27 = vpop.f32.mrb[9].mxu1 }
 0x435   : > { %v940_v28 = vpop.f32.mrb[10].mxu1 }
 0x436   : > { %v1289_v29 = vpop.f32.mrb[11].mxu1 }
 0x438   : > { %965 = vperm.xlu0 %1328, %v1348_v30  }
 0x481   : > { %v973_v36 = vpop.permute.xlu1 %972 }
 0x4a6   : > { %v952_v1 = vpop.permute.xlu0 %951 }
 0x4a7   : > { %v954_v35 = vadd.f32 %v952_v1, %v949_v34 }
 0x4a9   : > { %956 = vst.msk [vmem:[#allocation4] sm:$0xff] %vm955_vm6, %v954_v35 }
 0x4b0   : > { %v976_v39 = vld [vmem:[#allocation4] sm:$0xff] }
 0x4b7   : > { %v966_v37 = vpop.permute.xlu0 %965 }
 0x4b8   : > { %v975_v38 = vsel %vm684_vm2, %v966_v37, %v973_v36 }
 0x4b9   : > { %v977_v40 = vmul.f32 %v976_v39, %v975_v38 }
 0x4bb   : > { %v978_v41 = vpack.c.bf16 %v977_v40, %v977_v40 }
 0x4bd   : > { %1295 = vmatmul.mubr.msk.bf16.vlgmr.msra.gmra.mrb[12].mxu0 %vm541_vm1, %v978_v41 }
 0x590   : > { %v1039_v43 = vpop.f32.mrb[12].mxu0 }
 0x591   : > { %v1040_v45 = vadd.f32 %v1225_v42, %v1039_v43  ;;  %v1296_v46 = vpop.f32.mrb[13].mxu0 }
 0x592   : > { %v1042_v47 = vpop.f32.mrb[14].mxu0 }
 0x593   : > { %v1297_v48 = vpop.f32.mrb[15].mxu0  ;;  %v1046_v49 = vadd.f32 %v1045_v44, %v1040_v45 }
 0x595   : > { %v1047_v50 = vsel %vm541_vm1, %v1046_v49, 0.0 }
 0x596   : > { %1048 = vadd.xlane.f32.xlu0 %v1047_v50 }
 0x623   : > { %v1049_v51 = vpop.xlane.xlu0 %1048 }
 0x624   : > { %v1051_v52 = vmul.f32 0.03125, %v1049_v51 }
 0x626   : > { %v1052_v53 = vsub.f32 %v1046_v49, %v1051_v52 }
 0x628   : > { %v1053_v54 = vmul.f32 %v1052_v53, %v1052_v53 }
 0x62a   : > { %v1054_v55 = vsel %vm541_vm1, %v1053_v54, 0.0 }
 0x62b   : > { %1055 = vadd.xlane.f32.xlu1 %v1054_v55 }
 0x6b8   : > { %v1056_v56 = vpop.xlane.xlu1 %1055 }
 0x6b9   : > { %v1057_v57 = vmul.f32 0.03125, %v1056_v56 }
 0x6bb   : > { %v1058_v58 = vadd.f32 1e-05, %v1057_v57 }
 0x6bd   : > { %1349 = vrsqrt.f32 %v1058_v58 }
 0x6c7   : > { %v1350_v59 = vpop.eup %1349 }
 0x6c8   : > { %v1060_v61 = vmul.f32 %v1350_v59, %v1052_v53 }
 0x6ca   : > { %v1068_v63 = vmul.f32 %v1229_v60, %v1060_v61 }
 0x6cc   : > { %v1076_v0 = vadd.f32 %v1230_v62, %v1068_v63 }
 0x6ce   : > { %v1077_v2 = vpack.c.bf16 %v1076_v0, %v1076_v0 }
 0x6d0   : > { %1079 = vst.msk [vmem:[%s530_s26] sm:$0xf] %vm1078_vm7, %v1077_v2 }
 0x6d1 PF: > { %s22_s23 = sadd.s32 1, %s1373_s23   ;;  %s1605_s21 = smov %s1369_s22 }
 0x6d2   : > { %p19_p5 = scmp.ge.s32.totalorder %s22_s23, 4   ;;  %s1606_s22 = smov %s1608_s24 }
 0x6d4   :  { %21 = sbr.rel (!%p19_p5) target bundleno = 2 (0x2), region = 117 }

// kernel: _lambda_.9
= control target key start
LH: loop header
LB: loop body
LE: loop exit
PB: predicated region body
PF: predicated region fallthrough
CT: control target
= control target key end

     0   :  { %vm32_vm0 = vcmask 261120   ;;  %s443_s0 = inlined_call_operand.vmem [shape: bf16[16,32], index: 0, kind: input, shape index: {}]   ;;  %s444_s1 = inlined_call_operand.vmem [shape: f32[1,32], index: 1, kind: input, shape index: {}]   ;;  %s445_s2 = inlined_call_operand.vmem [shape: f32[1,32], index: 2, kind: input, shape index: {}]   ;;  %s446_s3 = inlined_call_operand.vmem [shape: bf16[32,64], index: 3, kind: input, shape index: {}]   ;;  %s447_s4 = inlined_call_operand.vmem [shape: f32[1,64], index: 4, kind: input, shape index: {}]   ;;  %s448_s5 = inlined_call_operand.vmem [shape: bf16[64,32], index: 5, kind: input, shape index: {}]   ;;  %s449_s6 = inlined_call_operand.vmem [shape: f32[1,32], index: 6, kind: input, shape index: {}]   ;;  %s450_s7 = inlined_call_operand.hbm [shape: f32[16,32], index: 7, kind: output, shape index: {}]  }
   0x1   :  { %v266_v0 = vld [vmem:[%s443_s0] sm:$0xff]  }
   0x2   :  { %v384_v1 = vunpack.c.l.bf16 %v266_v0  ;;  %v386_v2 = vunpack.c.h.bf16 %v266_v0 }
   0x4   :  { %v33_v3 = vsel %vm32_vm0, %v384_v1, 0.0 }
   0x5   :  { %34 = vadd.xlane.f32.xlu0 %v33_v3 }
   0x6   :  { %12 = vsyncpa [#allocation3], 0  ;;  %v36_v4 = vsel %vm32_vm0, %v386_v2, 0.0  ;;  %v302_v15 = vld [vmem:[%s446_s3] sm:$0xff]   ;;  %v336_v16 = vmov 0.0   ;;  %v303_v17 = vld [vmem:[%s446_s3 + $0x8] sm:$0xff]  }
   0x7   :  { %277 = vmatprep.subr.bf16.mxu0 %v336_v16  ;;  %285 = vmatprep.subr.bf16.mxu1 %v336_v16  ;;  %vm337_vm1 = vmmov 0   ;;  %v304_v18 = vld [vmem:[%s448_s5] sm:$0xff]   ;;  %v305_v19 = vld [vmem:[%s448_s5 + $0x8] sm:$0xff]   ;;  %v306_v37 = vld [vmem:[%s448_s5 + $0x10] sm:$0xff]   ;;  %vm188_vm2 = vcmask 523264  }
   0x8   :  { %278 = vmatpush3.bf16.msra.mxu0 %v302_v15  ;;  %281 = vmatprep.mubr.msk.bf16.mxu0 %vm337_vm1, %v336_v16  ;;  %v253_v28 = vld [vmem:[%s444_s1] ss:$0 sm:$0xff]  ;;  %v307_v38 = vld [vmem:[%s448_s5 + $0x18] sm:$0xff]   ;;  %s338_s5 = smov [#allocation2]  }
   0x9   :  { %37 = vadd.xlane.f32.xlu0 %v36_v4  ;;  %279 = vmatprep.subr.bf16.mxu0 %v336_v16  ;;  %v254_v32 = vld [vmem:[%s445_s2] ss:$0 sm:$0xff] }
   0xa   :  { %293 = vmatprep.mubr.msk.bf16.mxu1 %vm337_vm1, %v336_v16  ;;  %286 = vmatpush3.bf16.msra.mxu1 %v304_v18  ;;  %v255_v39 = vld [vmem:[%s447_s4] ss:$0 sm:$0xff]  ;;  %s242_s4 = sshll.u32 %s338_s5, 4  ;;  %s243_s4 = int_to_ptr.vmem [resolvable:$true] %s242_s4 }
   0xb   :  { %287 = vmatprep.subr.bf16.mxu1 %v336_v16  ;;  %v259_v49 = vld [vmem:[%s449_s6] ss:$0 sm:$0xff]  ;;  %s312_s19 = scalar_lea.vmem %s243_s4, 256  ;;  %p317_p1 = scmp.lt.s32.totalorder %s243_s4, %s243_s4 }
   0xc   :  { %280 = vmatpush3.bf16.msra.mxu0 %v303_v17  ;;  %p313_p0 = scmp.ne.s32.totalorder %s243_s4, %s312_s19  ;;  %p318_p2 = scmp.lt.s32.totalorder %s312_s19, %s312_s19 }
   0xe   :  { %288 = vmatpush3.bf16.msra.mxu1 %v305_v19  ;;  %p319_p3 = por %p318_p2, %p317_p1 }
   0xf   :  { %289 = vmatprep.subr.bf16.mxu1 %v336_v16 }
  0x10   :  { %p320_p4 = pnand %p319_p3, %p313_p0 }
  0x12   :  { %290 = vmatpush3.bf16.msra.mxu1 %v306_v37 }
  0x13   :  { %291 = vmatprep.subr.bf16.mxu1 %v336_v16 }
  0x16   :  { %292 = vmatpush3.bf16.msra.mxu1 %v307_v38 }
  0x92   :  { %v35_v5 = vpop.xlane.xlu0 %34 }
  0x93   :  { %v40_v6 = vmul.f32 0.03125, %v35_v5 }
  0x95   :  { %v42_v7 = vsub.f32 %v384_v1, %v40_v6 }
  0x96   :  { %v38_v8 = vpop.xlane.xlu0 %37 }
  0x97   :  { %v41_v9 = vmul.f32 0.03125, %v38_v8  ;;  %v44_v10 = vmul.f32 %v42_v7, %v42_v7 }
  0x99   :  { %v43_v11 = vsub.f32 %v386_v2, %v41_v9  ;;  %v46_v12 = vsel %vm32_vm0, %v44_v10, 0.0 }
  0x9a   :  { %47 = vadd.xlane.f32.xlu1 %v46_v12 }
  0x9b   :  { %v45_v13 = vmul.f32 %v43_v11, %v43_v11 }
  0x9d   :  { %v49_v14 = vsel %vm32_vm0, %v45_v13, 0.0 }
  0x9e   :  { %50 = vadd.xlane.f32.xlu1 %v49_v14 }
 0x127   :  { %v48_v20 = vpop.xlane.xlu1 %47 }
 0x128   :  { %v52_v21 = vmul.f32 0.03125, %v48_v20 }
 0x12a   :  { %v54_v22 = vadd.f32 1e-05, %v52_v21 }
 0x12b   :  { %v51_v23 = vpop.xlane.xlu1 %50 }
 0x12c   :  { %308 = vrsqrt.f32 %v54_v22  ;;  %v53_v24 = vmul.f32 0.03125, %v51_v23 }
 0x12e   :  { %v55_v25 = vadd.f32 1e-05, %v53_v24 }
 0x130   :  { %310 = vrsqrt.f32 %v55_v25 }
 0x136   :  { %v309_v26 = vpop.eup %308 }
 0x137   :  { %v58_v27 = vmul.f32 %v309_v26, %v42_v7 }
 0x139   :  { %v67_v31 = vmul.f32 %v253_v28, %v58_v27 }
 0x13a   :  { %v311_v29 = vpop.eup %310 }
 0x13b   :  { %v59_v30 = vmul.f32 %v311_v29, %v43_v11  ;;  %v76_v34 = vadd.f32 %v254_v32, %v67_v31 }
 0x13d   :  { %v68_v33 = vmul.f32 %v253_v28, %v59_v30 }
 0x13f   :  { %v77_v35 = vadd.f32 %v254_v32, %v68_v33 }
 0x141   :  { %v78_v36 = vpack.c.bf16 %v77_v35, %v76_v34 }
 0x143   :  { %282 = vmatmul.mubr.msk.bf16.vlgmr.msra.gmra.mrb[0].mxu0 %vm32_vm0, %v78_v36 }
 0x216   :  { %v139_v40 = vpop.f32.mrb[0].mxu0 }
 0x217   :  { %v140_v41 = vadd.f32 %v255_v39, %v139_v40  ;;  %v283_v42 = vpop.f32.mrb[1].mxu0 }
 0x218   :  { %v142_v43 = vpop.f32.mrb[2].mxu0 }
 0x219   :  { %v143_v44 = vadd.f32 %v255_v39, %v142_v43  ;;  %v284_v45 = vpop.f32.mrb[3].mxu0  ;;  %v146_v46 = vmax.f32 %v140_v41, 0.0 }
 0x21b   :  { %v147_v47 = vmax.f32 %v143_v44, 0.0 }
 0x21d   :  { %v148_v48 = vpack.c.bf16 %v147_v47, %v146_v46 }
 0x21f   :  { %294 = vmatmul.mubr.msk.bf16.vlgmr.msra.gmra.mrb[0].mxu1 %vm188_vm2, %v148_v48 }
 0x2f2   :  { %v226_v50 = vpop.f32.mrb[0].mxu1 }
 0x2f3   :  { %v227_v51 = vadd.f32 %v259_v49, %v226_v50  ;;  %v295_v52 = vpop.f32.mrb[1].mxu1 }
 0x2f4   :  { %v229_v53 = vpop.f32.mrb[2].mxu1 }
 0x2f5   :  { %v233_v54 = vadd.f32 %v384_v1, %v227_v51  ;;  %v230_v55 = vadd.f32 %v259_v49, %v229_v53  ;;  %v296_v56 = vpop.f32.mrb[3].mxu1 }
 0x2f7   :  { %235 = vst.msk [vmem:[#allocation2] sm:$0xff] %vm32_vm0, %v233_v54  ;;  %v234_v57 = vadd.f32 %v386_v2, %v230_v55 }
 0x2f9   :  { %236 = vst.msk [vmem:[#allocation2 + $0x8] sm:$0xff] %vm32_vm0, %v234_v57 }
 0x2fa   :  { %323 = shalt.err (!%p320_p4)
}
 0x2fb   :  { %s324_s21 = scalar_lea.hbm %s450_s7, 256 }
 0x2fc   :  { %p325_p5 = scmp.ne.s32.totalorder %s450_s7, %s324_s21  ;;  %p328_p6 = scmp.lt.u32.totalorder %s324_s21, %s450_s7 }
 0x2fe   :  { %p330_p7 = pnand %p328_p6, %p325_p5 }
 0x300   :  { %333 = shalt.err (!%p330_p7)
}
 0x301   :  { %s339_s0 = smov 128   ;;  %s340_s26 = smov 8  }
 0x302   :  { %248 = dma.vmem_to_hbm [thread:$0]  %s243_s4, 256, %s450_s7, [#allocation3], %s339_s0, %s339_s0, %s340_s26  }
 0x303   :  { %334 = dma.done.wait [#allocation3], 256  }
 0x304   :  { %335 = vsyncadd [#allocation3], 4294967040 }
 0x305   :  { %252 = vsyncpa [#allocation3], 1 }

// kernel: _lambda_.8
= control target key start
LH: loop header
LB: loop body
LE: loop exit
PB: predicated region body
PF: predicated region fallthrough
CT: control target
= control target key end

     0   :  { %s1471_s21 = smov 0   ;;  %s1473_s22 = smov 0   ;;  %s1607_s0 = inlined_call_operand.vmem [shape: bf16[2,8,32], index: 0, kind: input, shape index: {}]   ;;  %s1608_s1 = inlined_call_operand.vmem [shape: f32[2,16,32], index: 1, kind: input, shape index: {}]   ;;  %s1609_s2 = inlined_call_operand.vmem [shape: f32[2,16,32], index: 2, kind: input, shape index: {}]   ;;  %s1610_s3 = inlined_call_operand.vmem [shape: bf16[2,8,32], index: 3, kind: input, shape index: {}]   ;;  %s1611_s4 = inlined_call_operand.vmem [shape: bf16[32,32], index: 4, kind: input, shape index: {}]   ;;  %s1612_s5 = inlined_call_operand.vmem [shape: f32[1,32], index: 5, kind: input, shape index: {}]   ;;  %s1613_s6 = inlined_call_operand.vmem [shape: bf16[32,32], index: 6, kind: input, shape index: {}]   ;;  %s1614_s7 = inlined_call_operand.vmem [shape: f32[1,32], index: 7, kind: input, shape index: {}]   ;;  %s1615_s8 = inlined_call_operand.vmem [shape: bf16[32,32], index: 8, kind: input, shape index: {}]   ;;  %s1616_s9 = inlined_call_operand.vmem [shape: f32[1,32], index: 9, kind: input, shape index: {}]   ;;  %s1617_s10 = inlined_call_operand.vmem [shape: f32[1,32], index: 10, kind: input, shape index: {}]   ;;  %s1618_s11 = inlined_call_operand.vmem [shape: f32[1,32], index: 11, kind: input, shape index: {}]   ;;  %s1619_s12 = inlined_call_operand.vmem [shape: bf16[2,8,32], index: 12, kind: output, shape index: {}]  }
   0x1   :  { %s1475_s23 = smov 0  }
   0x2 LB: > { %s41_s24 = sadd.s32 1, %s1394_s22  ;;  %p1227_p0 = scmp.ge.s32.totalorder %s1398_s23, 1  ;;  %s1398_s23 = sphi %s1475_s23, %s22_s23   ;;  %s1394_s22 = sphi %s1473_s22, %s1621_s22   ;;  %s1390_s21 = sphi %s1471_s21, %s1620_s21  }
   0x3   : > { %p43_p1 = scmp.ge.s32.totalorder %s41_s24, 2  ;;  %p435_p2 = scmp.lt.s32.totalorder %s1398_s23, 3 }
   0x5   : > { %s1623_s24 = smov (%p43_p1, %s41_s24), 0  ;;  %p436_p3 = pnand %p1227_p0, %p435_p2 }
   0x6   : > { %v1355_v0 = vld [vmem:[%s1611_s4] sm:$0xff] (!%p436_p3)   ;;  %v1400_v1 = vmov (!%p436_p3), 0.0   ;;  %v1356_v2 = vld [vmem:[%s1611_s4 + $0x8] sm:$0xff] (!%p436_p3)   ;;  %vm1401_vm0 = vmmov (!%p436_p3), 0   ;;  %p506_p4 = scmp.lt.s32.totalorder (!%p436_p3), %s1390_s21, 1  ;;  %vm557_vm1 = vcmask (!%p436_p3), 261120  }
   0x7   : > { %439 = sbr.rel (%p436_p3) target bundleno = 1747 (0x6d3), region = 68  ;;  %1275 = vmatprep.subr.bf16.mxu0 (!%p436_p3), %v1400_v1  ;;  %1283 = vmatprep.subr.bf16.mxu1 (!%p436_p3), %v1400_v1  ;;  %558 = vst.msk [vmem:[#allocation4] sm:$0xff] (!%p436_p3), %vm557_vm1, %v1400_v1  ;;  %v1235_v10 = vld [vmem:[%s1612_s5] ss:$0 sm:$0xff] (!%p436_p3)  ;;  %vm705_vm2 = vcmask (!%p436_p3), 130048   ;;  %v1359_v22 = vld [vmem:[%s1613_s6 + $0x8] sm:$0xff] (!%p436_p3)  }
   0x8   : > { %1276 = vmatpush3.bf16.msra.mxu0 (!%p436_p3), %v1355_v0  ;;  %1279 = vmatprep.mubr.msk.bf16.mxu0 (!%p436_p3), %vm1401_vm0, %v1400_v1  ;;  %v1358_v21 = vld [vmem:[%s1613_s6] sm:$0xff] (!%p436_p3)   ;;  %vm552_vm3 = vcmask (!%p436_p3), 7168   ;;  %v1403_v27 = vmov (!%p436_p3), -inf   ;;  %v1404_v33 = vmov (!%p436_p3), 0   ;;  %s1405_s19 = smov (!%p436_p3), 16   ;;  %vm969_vm4 = vcmask (!%p436_p3), 261248  }
   0x9   : > { %1277 = vmatprep.subr.bf16.mxu0 (!%p436_p3), %v1400_v1  ;;  %1287 = vmatprep.mubr.msk.bf16.mxu1 (!%p436_p3), %vm1401_vm0, %v1400_v1  ;;  %553 = vst.msk [vmem:[#allocation2] sm:$0xff] (!%p436_p3), %vm552_vm3, %v1403_v27  ;;  %554 = vst.msk [vmem:[#allocation2 + $0x8] sm:$0xff] (!%p436_p3), %vm552_vm3, %v1403_v27  ;;  %v1239_v34 = vld [vmem:[%s1614_s7] ss:$0 sm:$0xff] (!%p436_p3)  ;;  %vm1093_vm5 = vcmask (!%p436_p3), 257024  }
   0xa   : > { %1284 = vmatpush3.bf16.msra.mxu1 (!%p436_p3), %v1358_v21  ;;  %555 = vst.msk [vmem:[#allocation3] sm:$0xff] (!%p436_p3), %vm552_vm3, %v1400_v1  ;;  %556 = vst.msk [vmem:[#allocation3 + $0x8] sm:$0xff] (!%p436_p3), %vm552_vm3, %v1400_v1  ;;  %1353 = vset.pattern.permute.xlu0 (!%p436_p3), %v1404_v33  ;;  %v1360_v27 = vld [vmem:[%s1615_s8] sm:$0xff] (!%p436_p3)  }
   0xb   : > { %1285 = vmatprep.subr.bf16.mxu1 (!%p436_p3), %v1400_v1  ;;  %1354 = vset.pattern.permute.xlu1 (!%p436_p3), %v1404_v33 }
   0xc   : > { %1278 = vmatpush3.bf16.msra.mxu0 (!%p436_p3), %v1356_v2 }
   0xd   : > { %1291 = vmatprep.subr.bf16.mxu0 (!%p436_p3), %v1400_v1 }
   0xe   : > { %s1625_s21 = smov (!%p506_p4, %s1390_s21), 1  ;;  %1286 = vmatpush3.bf16.msra.mxu1 %v1359_v22 }
   0xf   : > { %s1256_s29 = sshll.u32 %s1625_s21, 4  ;;  %s1514_s18 = sshll.u32 %s1625_s21, 2  ;;  %1297 = vmatprep.subr.bf16.mxu1 %v1400_v1 }
  0x10   : > { %s521_s14 = scalar_lea.vmem %s1608_s1, %s1256_s29  ;;  %s531_s17 = scalar_lea.vmem %s1609_s2, %s1256_s29  ;;  %v752_v47 = vld [vmem:[#allocation2] sm:$0xff]  ;;  %v885_v51 = vld [vmem:[#allocation2 + $0x8] sm:$0xff] }
  0x11   : > { %v560_v3 = vld [vmem:[%s521_s14] sm:$0xff]  ;;  %v561_v4 = vld [vmem:[%s521_s14 + $0x8] sm:$0xff]  ;;  %s512_s27 = scalar_lea.vmem %s1607_s0, %s1514_s18  ;;  %s1402_s21 = smov 112   ;;  %v902_v21 = vld [vmem:[#allocation3 + $0x8] sm:$0xff] }
  0x12   : > { %v562_v5 = vld [vmem:[%s531_s17] sm:$0xff]  ;;  %v563_v6 = vld [vmem:[%s531_s17 + $0x8] sm:$0xff]  ;;  %v636_v23 = vpack.c.bf16 %v561_v4, %v560_v3 }
  0x13   : > { %v564_v7 = vadd.f32 %v562_v5, %v560_v3  ;;  %v565_v8 = vadd.f32 %v563_v6, %v561_v4  ;;  %v559_v17 = vld [vmem:[%s512_s27] sm:$0xf] }
  0x14   : > { %v1245_v20 = vcombine.low %v559_v17, %v559_v17  ;;  %1288 = vmatmul.mubr.msk.bf16.vlgmr.msra.gmra.mrb[0].mxu1 %vm557_vm1, %v636_v23 }
  0x15   : > { %v566_v9 = vpack.c.bf16 %v565_v8, %v564_v7  ;;  %1299 = vmatprep.mubr.msk.bf16.mxu1 %vm1401_vm0, %v1400_v1 }
  0x17   : > { %1280 = vmatmul.mubr.msk.bf16.vlgmr.msra.gmra.mrb[0].mxu0 %vm557_vm1, %v566_v9  ;;  %v768_v9 = vld [vmem:[#allocation3] sm:$0xff] }
  0x18   : > { %1293 = vmatprep.mubr.msk.bf16.mxu0 %vm1401_vm0, %v1400_v1 }
  0xe7   : > { %v697_v35 = vpop.f32.mrb[0].mxu1 }
  0xe8   : > { %v698_v36 = vadd.f32 %v1239_v34, %v697_v35  ;;  %v1289_v37 = vpop.f32.mrb[1].mxu1 }
  0xe9   : > { %v700_v38 = vpop.f32.mrb[2].mxu1 }
  0xea   : > { %v628_v11 = vpop.f32.mrb[0].mxu0  ;;  %v701_v39 = vadd.f32 %v1239_v34, %v700_v38  ;;  %v1290_v40 = vpop.f32.mrb[3].mxu1  ;;  %v1361_v34 = vld [vmem:[%s1615_s8 + $0x8] sm:$0xff]  }
  0xeb   : > { %v1281_v12 = vpop.f32.mrb[1].mxu0  ;;  %v629_v14 = vadd.f32 %v1235_v10, %v628_v11 }
  0xec   : > { %v631_v13 = vpop.f32.mrb[2].mxu0  ;;  %v704_v41 = vpack.c.bf16 %v701_v39, %v698_v36 }
  0xed   : > { %v632_v15 = vadd.f32 %v1235_v10, %v631_v13  ;;  %v1282_v16 = vpop.f32.mrb[3].mxu0  ;;  %v820_v13 = vld [vmem:[#allocation4] sm:$0xff] }
  0xee   : > { %1298 = vmatpush3.bf16.msra.mxu1 %v704_v41 }
  0xef   : > { %v635_v18 = vpack.c.bf16 %v632_v15, %v629_v14  ;;  %1309 = vmatprep.subr.bf16.mxu1 %v1400_v1 }
  0xf1   : > { %836 = vrot.lane.b32.xlu0 %v635_v18, %s1402_s21  ;;  %v710_v19 = vsel %vm705_vm2, %v635_v18, 0 }
  0xf2   : > { %1292 = vmatpush3.bf16.xpose.msra.mxu0 %v710_v19 }
  0xf3   : > { %1303 = vmatprep.subr.bf16.mxu0 %v1400_v1 }
  0xf5   : > { %833 = vrot.lane.b32.xlu0 %v1245_v20, %s1402_s21 }
  0xf9   : > { %1294 = vmatmul.mubr.msk.bf16.vlgmr.msra.gmra.mrb[4].mxu0 %vm705_vm2, %v559_v17 }
  0xfa   : > { %1305 = vmatprep.mubr.msk.bf16.mxu0 %vm1401_vm0, %v1400_v1 }
 0x163   : > { %v837_v24 = vpop.permute.xlu0 %836 }
 0x164   : > { %v842_v25 = vsel %vm705_vm2, %v837_v24, 0 }
 0x165   : > { %1304 = vmatpush3.bf16.xpose.msra.mxu0 %v842_v25 }
 0x166   : > { %1315 = vmatprep.subr.bf16.mxu0 %v1400_v1 }
 0x167   : > { %v834_v26 = vpop.permute.xlu0 %833 }
 0x16c   : > { %1306 = vmatmul.mubr.msk.bf16.vlgmr.msra.gmra.mrb[8].mxu0 %vm705_vm2, %v834_v26 }
 0x16d   : > { %1319 = vmatprep.mubr.msk.bf16.mxu0 %vm1401_vm0, %v1400_v1  ;;  %1316 = vmatpush3.bf16.msra.mxu0 %v1360_v27 }
 0x16e   : > { %1317 = vmatprep.subr.bf16.mxu0 %v1400_v1 }
 0x171   : > { %1318 = vmatpush3.bf16.msra.mxu0 %v1361_v34 }
 0x1cc   : > { %v746_v28 = vpop.f32.mrb[4].mxu0 }
 0x1cd   : > { %v753_v29 = vsel %vm705_vm2, %v746_v28, -inf  ;;  %v1295_v30 = vpop.f32.mrb[5].mxu0 }
 0x1ce   : > { %754 = vmax.xlane.f32.xlu1 %v753_v29  ;;  %v749_v31 = vpop.f32.mrb[6].mxu0 }
 0x1cf   : > { %v1296_v32 = vpop.f32.mrb[7].mxu0 }
 0x23f   : > { %v878_v42 = vpop.f32.mrb[8].mxu0 }
 0x240   : > { %v1307_v43 = vpop.f32.mrb[9].mxu0  ;;  %v886_v44 = vsel %vm705_vm2, %v878_v42, -inf }
 0x241   : > { %887 = vmax.xlane.f32.xlu1 %v886_v44  ;;  %v881_v45 = vpop.f32.mrb[10].mxu0 }
 0x242   : > { %v1308_v46 = vpop.f32.mrb[11].mxu0 }
 0x243   : > { %v1248_v46 = vld [vmem:[%s1616_s9] ss:$0 sm:$0xff] }
 0x25b   : > { %v755_v48 = vpop.xlane.xlu1 %754 }
 0x25c   : > { %v756_v49 = vmax.f32 %v752_v47, %v755_v48 }
 0x25e   : > { %v757_v50 = vsub.f32 %v752_v47, %v756_v49  ;;  %829 = vst.msk [vmem:[#allocation2] sm:$0xff] %vm552_vm3, %v756_v49  ;;  %762 = vperm.xlu0 %1353, %v756_v49  }
 0x260   : > { %v758_v62 = vmul.f32 1.442695, %v757_v50 }
 0x262   : > { %911 = vrot.lane.b32.xlu0 %v704_v41, %s1402_s21  ;;  %s539_s21 = scalar_lea.vmem %s1610_s3, %s1514_s18 }
 0x263   : > { %v1059_v45 = vld [vmem:[%s539_s21] sm:$0xf] }
 0x264   : > { %v1060_v47 = vunpack.c.l.bf16 %v1059_v45 }
 0x2ce   : > { %v888_v52 = vpop.xlane.xlu1 %887 }
 0x2cf   : > { %v889_v53 = vmax.f32 %v885_v51, %v888_v52 }
 0x2d1   : > { %v890_v54 = vsub.f32 %v885_v51, %v889_v53  ;;  %971 = vst.msk [vmem:[#allocation2 + $0x8] sm:$0xff] %vm552_vm3, %v889_v53  ;;  %895 = vperm.xlu1 %1354, %v889_v53  }
 0x2d3   : > { %v891_v7 = vmul.f32 1.442695, %v890_v54 }
 0x2dd   : > { %v763_v55 = vpop.permute.xlu0 %762 }
 0x2de   : > { %v765_v56 = vsub.f32 %v746_v28, %v763_v55 }
 0x2e0   : > { %v766_v57 = vmul.f32 1.442695, %v765_v56 }
 0x2e1   : > { %v912_v61 = vpop.permute.xlu0 %911 }
 0x2e2   : > { %1362 = vpow2.f32 %v766_v57 }
 0x2e3   : > { %1364 = vpow2.f32 %v758_v62 }
 0x2ec   : > { %v1363_v58 = vpop.eup %1362 }
 0x2ed   : > { %v770_v59 = vsel %vm705_vm2, %v1363_v58, 0.0  ;;  %v776_v60 = vpack.c.bf16 %v1363_v58, %v1363_v58  ;;  %v1365_v63 = vpop.eup %1364 }
 0x2ee   : > { %771 = vadd.xlane.f32.xlu0 %v770_v59  ;;  %v769_v10 = vmul.f32 %v1365_v63, %v768_v9 }
 0x2ef   : > { %1300 = vmatmul.mubr.msk.bf16.vlgmr.msra.gmra.mrb[4].mxu1 %vm705_vm2, %v776_v60 }
 0x2f0   : > { %1310 = vmatpush3.bf16.msra.mxu1 %v912_v61  ;;  %1311 = vmatprep.mubr.msk.bf16.mxu1 %vm1401_vm0, %v1400_v1 }
 0x304   : > { %823 = vperm.xlu0 %1353, %v1365_v63  }
 0x350   : > { %v896_v0 = vpop.permute.xlu1 %895 }
 0x351   : > { %v898_v2 = vsub.f32 %v878_v42, %v896_v0  ;;  %v1252_v0 = vld [vmem:[%s1617_s10] ss:$0 sm:$0xff] }
 0x353   : > { %v899_v3 = vmul.f32 1.442695, %v898_v2 }
 0x355   : > { %1366 = vpow2.f32 %v899_v3  ;;  %v1253_v3 = vld [vmem:[%s1618_s11] ss:$0 sm:$0xff] }
 0x356   : > { %1368 = vpow2.f32 %v891_v7 }
 0x35f   : > { %v1367_v4 = vpop.eup %1366 }
 0x360   : > { %v904_v5 = vsel %vm705_vm2, %v1367_v4, 0.0  ;;  %v909_v6 = vpack.c.bf16 %v1367_v4, %v1367_v4  ;;  %v1369_v8 = vpop.eup %1368 }
 0x361   : > { %905 = vadd.xlane.f32.xlu1 %v904_v5  ;;  %v903_v22 = vmul.f32 %v1369_v8, %v902_v21 }
 0x362   : > { %1312 = vmatmul.mubr.msk.bf16.vlgmr.msra.gmra.mrb[8].mxu1 %vm705_vm2, %v909_v6 }
 0x372   : > { %960 = vperm.xlu1 %1354, %v1369_v8  }
 0x37b   : > { %v772_v11 = vpop.xlane.xlu0 %771 }
 0x37c   : > { %v773_v12 = vadd.f32 %v772_v11, %v769_v10 }
 0x37e   : > { %775 = vst.msk [vmem:[#allocation3] sm:$0xff] %vm552_vm3, %v773_v12 }
 0x383   : > { %v824_v14 = vpop.permute.xlu0 %823 }
 0x384   : > { %v826_v15 = vmul.f32 %v824_v14, %v820_v13 }
 0x385   : > { %v975_v28 = vld [vmem:[#allocation3] sm:$0xff] }
 0x3c2   : > { %v814_v16 = vpop.f32.mrb[4].mxu1 }
 0x3c3   : > { %v827_v17 = vadd.f32 %v826_v15, %v814_v16  ;;  %v1301_v18 = vpop.f32.mrb[5].mxu1 }
 0x3c4   : > { %v817_v19 = vpop.f32.mrb[6].mxu1 }
 0x3c5   : > { %828 = vst.msk [vmem:[#allocation4] sm:$0xff] %vm705_vm2, %v827_v17  ;;  %v1302_v20 = vpop.f32.mrb[7].mxu1 }
 0x3cc   : > { %v957_v36 = vld [vmem:[#allocation4] sm:$0xff] }
 0x3ee   : > { %v906_v23 = vpop.xlane.xlu1 %905 }
 0x3ef   : > { %v907_v24 = vadd.f32 %v906_v23, %v903_v22 }
 0x3f1   : > { %908 = vst.msk [vmem:[#allocation3 + $0x8] sm:$0xff] %vm552_vm3, %v907_v24 }
 0x3f2   : > { %v961_v35 = vpop.permute.xlu1 %960 }
 0x3f3   : > { %v963_v37 = vmul.f32 %v961_v35, %v957_v36 }
 0x3f8   : > { %v982_v25 = vld [vmem:[#allocation3 + $0x8] sm:$0xff] }
 0x3f9   : > { %1370 = vrcp.f32 %v982_v25 }
 0x3fa   : > { %1372 = vrcp.f32 %v975_v28 }
 0x403   : > { %v1371_v26 = vpop.eup %1370 }
 0x404   : > { %986 = vperm.xlu1 %1354, %v1371_v26   ;;  %v1373_v33 = vpop.eup %1372 }
 0x435   : > { %v951_v29 = vpop.f32.mrb[8].mxu1 }
 0x436   : > { %965 = vrot.lane.b32.xlu0 %v951_v29, %s1405_s19  ;;  %v1313_v30 = vpop.f32.mrb[9].mxu1  ;;  %s546_s19 = scalar_lea.vmem %s1619_s12, %s1514_s18 }
 0x437   : > { %v954_v31 = vpop.f32.mrb[10].mxu1 }
 0x438   : > { %v1314_v32 = vpop.f32.mrb[11].mxu1 }
 0x43a   : > { %979 = vperm.xlu0 %1353, %v1373_v33  }
 0x483   : > { %v987_v39 = vpop.permute.xlu1 %986 }
 0x4a8   : > { %v966_v1 = vpop.permute.xlu0 %965 }
 0x4a9   : > { %v968_v38 = vadd.f32 %v966_v1, %v963_v37 }
 0x4ab   : > { %970 = vst.msk [vmem:[#allocation4] sm:$0xff] %vm969_vm4, %v968_v38 }
 0x4b2   : > { %v990_v42 = vld [vmem:[#allocation4] sm:$0xff] }
 0x4b9   : > { %v980_v40 = vpop.permute.xlu0 %979 }
 0x4ba   : > { %v989_v41 = vsel %vm705_vm2, %v980_v40, %v987_v39 }
 0x4bb   : > { %v991_v43 = vmul.f32 %v990_v42, %v989_v41 }
 0x4bd   : > { %v992_v44 = vpack.c.bf16 %v991_v43, %v991_v43 }
 0x4bf   : > { %1320 = vmatmul.mubr.msk.bf16.vlgmr.msra.gmra.mrb[12].mxu0 %vm557_vm1, %v992_v44 }
 0x592   : > { %v1053_v48 = vpop.f32.mrb[12].mxu0 }
 0x593   : > { %v1054_v49 = vadd.f32 %v1248_v46, %v1053_v48  ;;  %v1321_v50 = vpop.f32.mrb[13].mxu0 }
 0x594   : > { %v1056_v51 = vpop.f32.mrb[14].mxu0 }
 0x595   : > { %v1322_v52 = vpop.f32.mrb[15].mxu0  ;;  %v1061_v53 = vadd.f32 %v1060_v47, %v1054_v49 }
 0x597   : > { %v1062_v54 = vsel %vm557_vm1, %v1061_v53, 0.0 }
 0x598   : > { %1063 = vadd.xlane.f32.xlu0 %v1062_v54 }
 0x625   : > { %v1064_v55 = vpop.xlane.xlu0 %1063 }
 0x626   : > { %v1066_v56 = vmul.f32 0.03125, %v1064_v55 }
 0x628   : > { %v1067_v57 = vsub.f32 %v1061_v53, %v1066_v56 }
 0x62a   : > { %v1068_v58 = vmul.f32 %v1067_v57, %v1067_v57 }
 0x62c   : > { %v1069_v59 = vsel %vm557_vm1, %v1068_v58, 0.0 }
 0x62d   : > { %1070 = vadd.xlane.f32.xlu1 %v1069_v59 }
 0x6ba   : > { %v1071_v60 = vpop.xlane.xlu1 %1070 }
 0x6bb   : > { %v1072_v61 = vmul.f32 0.03125, %v1071_v60 }
 0x6bd   : > { %v1073_v62 = vadd.f32 1e-05, %v1072_v61 }
 0x6bf   : > { %1374 = vrsqrt.f32 %v1073_v62 }
 0x6c9   : > { %v1375_v63 = vpop.eup %1374 }
 0x6ca   : > { %v1075_v2 = vmul.f32 %v1375_v63, %v1067_v57 }
 0x6cc   : > { %v1083_v4 = vmul.f32 %v1252_v0, %v1075_v2 }
 0x6ce   : > { %v1091_v5 = vadd.f32 %v1253_v3, %v1083_v4 }
 0x6d0   : > { %v1092_v6 = vpack.c.bf16 %v1091_v5, %v1091_v5 }
 0x6d2   : > { %1094 = vst.msk [vmem:[%s546_s19] sm:$0xf] %vm1093_vm5, %v1092_v6 }
 0x6d3 PF: > { %s22_s23 = sadd.s32 1, %s1398_s23   ;;  %s1620_s21 = smov %s1394_s22 }
 0x6d4   : > { %p19_p5 = scmp.ge.s32.totalorder %s22_s23, 4   ;;  %s1621_s22 = smov %s1623_s24 }
 0x6d6   :  { %21 = sbr.rel (!%p19_p5) target bundleno = 2 (0x2), region = 117 }

</bundles_post_ra>
